<compile_context>
chip_gen: v6e
topology: v6e:2x2x1
jax: 0.10.0
libtpu: 0.0.40
codegen_flags: <defaults>
</compile_context>

<pallas_src>
import math
import jax
import jax.numpy as jnp
from jax.experimental import pallas as pl
from jax.experimental.pallas import tpu as pltpu

# ---- small BERT config (consistent with BertConfig fields) ----
VOCAB = 64
HIDDEN = 32
NUM_LAYERS = 2
NUM_HEADS = 4
HEAD_DIM = HIDDEN // NUM_HEADS
INTERMEDIATE = 64
MAX_POS = 16
TYPE_VOCAB = 2
INIT_RANGE = 0.02
LN_EPS = 1e-12
LANE = 128          # TPU lane width; narrow outputs are padded to this


def _layernorm(x, g, b):
    # torch.nn.LayerNorm semantics (biased variance, eps inside sqrt), f32
    mu = jnp.mean(x, axis=-1, keepdims=True)
    var = jnp.mean(jnp.square(x - mu), axis=-1, keepdims=True)
    return (x - mu) * jax.lax.rsqrt(var + LN_EPS) * g + b


def _gelu(x):
    # exact (erf-based) GELU, as in pytorch_pretrained_bert, f32
    return x * 0.5 * (1.0 + jax.lax.erf(x * (1.0 / math.sqrt(2.0))))


def _bf16(x):
    return x.astype(jnp.bfloat16)


# ------------------------ fused Pallas kernel (one grid step = one batch row) ----

def bert_pretraining_kernel(
        emb_ref, kbias_ref, eg_ref, eb_ref,
        wqkv_ref, bqkv_ref, wao_ref, wfi_ref, bfi_ref, wfo_ref, vec_ref,
        wp_ref, bp_ref, wn_ref, bn_ref,
        wt_ref, bt_ref, mg_ref, mb_ref, dw_ref, db_ref,
        mlm_ref, nsp_ref):
    num_layers = wqkv_ref.shape[0]
    seq = emb_ref.shape[0]
    scale = 1.0 / math.sqrt(HEAD_DIM)

    # per-key additive mask for this batch: (1, 1, S), broadcasts over (head, query)
    bias = kbias_ref[...]

    # embeddings LayerNorm (f32)
    x = _layernorm(emb_ref[...], eg_ref[...], eb_ref[...])
    # TODO(synk): embedding/attention/hidden dropout omitted (eval-mode semantics)

    # TODO(synk): at real depth replace this static unroll with a layer grid axis
    # that streams the stacked weight slabs (pl.Buffered) instead of keeping all
    # layers resident.
    for l in range(num_layers):
        vec = vec_ref[l]                             # (6, H) packed f32 vectors
        b_attn, g1, b1 = vec[0:1], vec[1:2], vec[2:3]
        b_ffn, g2, b2 = vec[3:4], vec[4:5], vec[5:6]

        # fused QKV projection: bf16 operands, f32 accumulation
        qkv = jnp.dot(_bf16(x), wqkv_ref[l],
                      preferred_element_type=jnp.float32) + bqkv_ref[l]   # (S, 3H) f32

        # head split: one 2-D transpose + leading-dim reshapes (no per-head slices)
        qkv_t = qkv.T                                                     # (3H, S)
        qh = jnp.swapaxes(
            qkv_t[0:HIDDEN].reshape(NUM_HEADS, HEAD_DIM, seq), 1, 2)      # (NH, S, HD)
        kh = qkv_t[HIDDEN:2 * HIDDEN].reshape(NUM_HEADS, HEAD_DIM, seq)   # (NH, HD, S)
        vh = qkv_t[2 * HIDDEN:3 * HIDDEN].reshape(NUM_HEADS, HEAD_DIM, seq)

        # all heads in two batched matmuls; scores/softmax stay f32
        s = jnp.einsum('hqd,hdk->hqk', _bf16(qh), _bf16(kh),
                       preferred_element_type=jnp.float32) * scale + bias
        s = s - jnp.max(s, axis=-1, keepdims=True)
        p = jnp.exp(s)
        p = p * pl.reciprocal(jnp.sum(p, axis=-1, keepdims=True), approx=True)
        ctx = jnp.einsum('hdk,hqk->hdq', _bf16(vh), _bf16(p),
                         preferred_element_type=jnp.float32)              # (NH, HD, S)
        ctx = ctx.reshape(HIDDEN, seq).T                                  # (S, H)

        attn = jnp.dot(_bf16(ctx), wao_ref[l],
                       preferred_element_type=jnp.float32) + b_attn
        h1 = _layernorm(x + attn, g1, b1)

        inter = _gelu(jnp.dot(_bf16(h1), wfi_ref[l],
                              preferred_element_type=jnp.float32) + bfi_ref[l])
        ffn = jnp.dot(_bf16(inter), wfo_ref[l],
                      preferred_element_type=jnp.float32) + b_ffn
        x = _layernorm(h1 + ffn, g2, b2)

    # ---- MLM head: transform (dense -> gelu -> LN) + tied decoder ----
    # decoder weight / bias are lane-padded to 128 columns (unmasked vst);
    # wrapper slices the first VOCAB columns.
    # TODO(synk): at real vocab (30k+) tile the decoder N dimension with a grid
    # axis instead of lane-padding.
    t = _gelu(jnp.dot(_bf16(x), wt_ref[...],
                      preferred_element_type=jnp.float32) + bt_ref[...])
    t = _layernorm(t, mg_ref[...], mb_ref[...])
    mlm_ref[...] = (jnp.dot(_bf16(t), dw_ref[...],
                            preferred_element_type=jnp.float32)
                    + db_ref[...]).astype(mlm_ref.dtype)

    # ---- Pooler + NSP head on the [CLS] row (row 0 of this batch block) ----
    cls_x = x[0:1, :]
    pooled = jnp.tanh(jnp.dot(_bf16(cls_x), wp_ref[...],
                              preferred_element_type=jnp.float32) + bp_ref[...])
    nsp = jnp.dot(_bf16(pooled), wn_ref[...],
                  preferred_element_type=jnp.float32) + bn_ref[...]       # (1, LANE)
    nsp_ref[...] = jnp.broadcast_to(nsp, nsp_ref.shape).astype(nsp_ref.dtype)


# ------------------------ wrapper ------------------------

def _replicated_spec(a):
    # weights / biases: full-array block, same block for every grid step
    if a.ndim == 2:
        return pl.BlockSpec(a.shape, lambda b: (0, 0))
    return pl.BlockSpec(a.shape, lambda b: (0, 0, 0))


def bert_pretraining_forward(params, input_ids, token_type_ids=None, attention_mask=None):
    B, S = input_ids.shape
    if attention_mask is None:
        attention_mask = jnp.ones_like(input_ids)
    if token_type_ids is None:
        token_type_ids = jnp.zeros_like(input_ids)

    # --- glue: embedding gathers (no clean Pallas gather at this scale) ---
    pos_ids = jnp.arange(S, dtype=jnp.int32)
    emb = (jnp.take(params["word_emb"], input_ids, axis=0)
           + params["pos_emb"][pos_ids][None, :, :]
           + jnp.take(params["type_emb"], token_type_ids, axis=0))
    emb2d = emb.reshape(B * S, HIDDEN).astype(jnp.float32)

    # --- additive key mask per batch: (B, 1, S); the batch grid replaces the old
    #     dense block-diagonal (B*S, B*S) bias entirely ---
    key_bias = ((1.0 - attention_mask.astype(jnp.float32)) * -10000.0).reshape(B, 1, S)

    # --- pack per-layer params into a few stacked slabs; weight matrices in bf16 ---
    bf16 = jnp.bfloat16
    L = params["layers"]
    wqkv = jnp.stack([jnp.concatenate([lp["wq"], lp["wk"], lp["wv"]], axis=1)
                      for lp in L]).astype(bf16)
    bqkv = jnp.stack([jnp.concatenate([lp["bq"], lp["bk"], lp["bv"]], axis=1) for lp in L])
    wao = jnp.stack([lp["wo"] for lp in L]).astype(bf16)
    wfi = jnp.stack([lp["wi"] for lp in L]).astype(bf16)
    bfi = jnp.stack([lp["bi"] for lp in L])
    wfo = jnp.stack([lp["wo2"] for lp in L]).astype(bf16)
    vec = jnp.stack([jnp.concatenate([lp["bo"], lp["g1"], lp["b1"],
                                      lp["bo2"], lp["g2"], lp["b2"]], axis=0) for lp in L])

    # --- lane-pad narrow heads to 128 output lanes (dense vst), slice later ---
    wp = params["wp"].astype(bf16)
    wn_pad = jnp.pad(params["wn"], ((0, 0), (0, LANE - 2))).astype(bf16)
    bn_pad = jnp.pad(params["bn"], ((0, 0), (0, LANE - 2)))
    wt = params["wt"].astype(bf16)
    dec_w = jnp.pad(params["word_emb"].T, ((0, 0), (0, LANE - VOCAB))).astype(bf16)
    dec_b = jnp.pad(params["dec_bias"], ((0, 0), (0, LANE - VOCAB)))

    args = [emb2d, key_bias, params["emb_ln_g"], params["emb_ln_b"],
            wqkv, bqkv, wao, wfi, bfi, wfo, vec,
            wp, params["bp"], wn_pad, bn_pad,
            wt, params["bt"], params["mlm_g"], params["mlm_b"], dec_w, dec_b]

    in_specs = [pl.BlockSpec((S, HIDDEN), lambda b: (b, 0)),      # activation row tile
                pl.BlockSpec((1, 1, S), lambda b: (b, 0, 0))]     # per-batch key mask
    in_specs += [_replicated_spec(a) for a in args[2:]]           # resident weights

    out_specs = (pl.BlockSpec((S, LANE), lambda b: (b, 0)),
                 pl.BlockSpec((8, LANE), lambda b: (b, 0)))

    mlm_pad, nsp_pad = pl.pallas_call(
        bert_pretraining_kernel,
        grid=(B,),
        out_shape=(jax.ShapeDtypeStruct((B * S, LANE), jnp.float32),
                   jax.ShapeDtypeStruct((B * 8, LANE), jnp.float32)),
        in_specs=in_specs,
        out_specs=out_specs,
        compiler_params=pltpu.CompilerParams(
            dimension_semantics=("parallel",),        # batch grid -> both v7x TCs
            vmem_limit_bytes=32 * 1024 * 1024),       # explicit, huge headroom here
    )(*args)

    prediction_scores = mlm_pad[:, :VOCAB].reshape(B, S, VOCAB)       # (B, S, vocab)
    seq_relationship_score = nsp_pad.reshape(B, 8, LANE)[:, 0, :2]    # (B, 2)
    # TODO(synk): optional masked-LM / NSP loss branch (labels given) not implemented.
    return prediction_scores, seq_relationship_score


# ------------------------ params ------------------------

def init_params():
    key = jax.random.PRNGKey(0)
    keys = iter(jax.random.split(key, 64))

    def nrm(shape):
        return jax.random.normal(next(keys), shape, dtype=jnp.float32) * INIT_RANGE

    zeros = lambda s: jnp.zeros(s, jnp.float32)
    ones = lambda s: jnp.ones(s, jnp.float32)

    params = {
        "word_emb": nrm((VOCAB, HIDDEN)),
        "pos_emb": nrm((MAX_POS, HIDDEN)),
        "type_emb": nrm((TYPE_VOCAB, HIDDEN)),
        "emb_ln_g": ones((1, HIDDEN)),
        "emb_ln_b": zeros((1, HIDDEN)),
        "layers": [],
    }
    for _ in range(NUM_LAYERS):
        params["layers"].append({
            "wq": nrm((HIDDEN, HIDDEN)), "bq": zeros((1, HIDDEN)),
            "wk": nrm((HIDDEN, HIDDEN)), "bk": zeros((1, HIDDEN)),
            "wv": nrm((HIDDEN, HIDDEN)), "bv": zeros((1, HIDDEN)),
            "wo": nrm((HIDDEN, HIDDEN)), "bo": zeros((1, HIDDEN)),
            "g1": ones((1, HIDDEN)), "b1": zeros((1, HIDDEN)),
            "wi": nrm((HIDDEN, INTERMEDIATE)), "bi": zeros((1, INTERMEDIATE)),
            "wo2": nrm((INTERMEDIATE, HIDDEN)), "bo2": zeros((1, HIDDEN)),
            "g2": ones((1, HIDDEN)), "b2": zeros((1, HIDDEN)),
        })
    # pooler + NSP head
    params["wp"] = nrm((HIDDEN, HIDDEN))
    params["bp"] = zeros((1, HIDDEN))
    params["wn"] = nrm((HIDDEN, 2))
    params["bn"] = zeros((1, 2))
    # MLM head (transform + LN; decoder weight tied to word_emb, bias separate)
    params["wt"] = nrm((HIDDEN, HIDDEN))
    params["bt"] = zeros((1, HIDDEN))
    params["mlm_g"] = ones((1, HIDDEN))
    params["mlm_b"] = zeros((1, HIDDEN))
    params["dec_bias"] = zeros((1, VOCAB))
    return params


if __name__ == "__main__":
    params = init_params()

    batch, seq = 2, 8
    input_ids = jax.random.randint(jax.random.PRNGKey(0), (batch, seq), 0, VOCAB,
                                   dtype=jnp.int32)
    token_type_ids = jnp.array([[0, 0, 0, 0, 1, 1, 1, 1],
                                [0, 0, 1, 1, 1, 1, 1, 1]], dtype=jnp.int32)
    attention_mask = jnp.array([[1, 1, 1, 1, 1, 1, 1, 1],
                                [1, 1, 1, 1, 1, 1, 0, 0]], dtype=jnp.int32)

    pred_scores, nsp_logits = bert_pretraining_forward(
        params, input_ids, token_type_ids, attention_mask)
    pred_scores, nsp_logits = jax.block_until_ready((pred_scores, nsp_logits))

    assert pred_scores.shape == (batch, seq, VOCAB) and pred_scores.dtype == jnp.float32
    assert nsp_logits.shape == (batch, 2) and nsp_logits.dtype == jnp.float32
    print("KERNEL_OK")
</pallas_src>

<mosaic_0001>
module attributes {stable_mosaic.version = 11 : i64} {
  func.func @bert_pretraining_kernel(%arg0: i32, %arg1: memref<8x32xf32, #tpu.memory_space<vmem>>, %arg2: memref<1x1x8xf32, #tpu.memory_space<vmem>>, %arg3: memref<1x32xf32, #tpu.memory_space<vmem>>, %arg4: memref<1x32xf32, #tpu.memory_space<vmem>>, %arg5: memref<2x32x96xbf16, #tpu.memory_space<vmem>>, %arg6: memref<2x1x96xf32, #tpu.memory_space<vmem>>, %arg7: memref<2x32x32xbf16, #tpu.memory_space<vmem>>, %arg8: memref<2x32x64xbf16, #tpu.memory_space<vmem>>, %arg9: memref<2x1x64xf32, #tpu.memory_space<vmem>>, %arg10: memref<2x64x32xbf16, #tpu.memory_space<vmem>>, %arg11: memref<2x6x32xf32, #tpu.memory_space<vmem>>, %arg12: memref<32x32xbf16, #tpu.memory_space<vmem>>, %arg13: memref<1x32xf32, #tpu.memory_space<vmem>>, %arg14: memref<32x128xbf16, #tpu.memory_space<vmem>>, %arg15: memref<1x128xf32, #tpu.memory_space<vmem>>, %arg16: memref<32x32xbf16, #tpu.memory_space<vmem>>, %arg17: memref<1x32xf32, #tpu.memory_space<vmem>>, %arg18: memref<1x32xf32, #tpu.memory_space<vmem>>, %arg19: memref<1x32xf32, #tpu.memory_space<vmem>>, %arg20: memref<32x128xbf16, #tpu.memory_space<vmem>>, %arg21: memref<1x128xf32, #tpu.memory_space<vmem>>, %arg22: memref<8x128xf32, #tpu.memory_space<vmem>>, %arg23: memref<8x128xf32, #tpu.memory_space<vmem>>) attributes {dimension_semantics = [#tpu.dimension_semantics<parallel>], iteration_bounds = array<i64: 2>, scalar_prefetch = 0 : i64, scratch_operands = 0 : i64, tpu.core_type = #tpu.core_type<tc>, window_params = [{transform_indices = @transform_0, window_bounds = array<i64: 8, 32>}, {transform_indices = @transform_1, window_bounds = array<i64: 1, 1, 8>}, {pipeline_mode = #tpu.pipeline_mode<synchronous>, transform_indices = @transform_2, window_bounds = array<i64: 1, 32>}, {pipeline_mode = #tpu.pipeline_mode<synchronous>, transform_indices = @transform_3, window_bounds = array<i64: 1, 32>}, {pipeline_mode = #tpu.pipeline_mode<synchronous>, transform_indices = @transform_4, window_bounds = array<i64: 2, 32, 96>}, {pipeline_mode = #tpu.pipeline_mode<synchronous>, transform_indices = @transform_5, window_bounds = array<i64: 2, 1, 96>}, {pipeline_mode = #tpu.pipeline_mode<synchronous>, transform_indices = @transform_6, window_bounds = array<i64: 2, 32, 32>}, {pipeline_mode = #tpu.pipeline_mode<synchronous>, transform_indices = @transform_7, window_bounds = array<i64: 2, 32, 64>}, {pipeline_mode = #tpu.pipeline_mode<synchronous>, transform_indices = @transform_8, window_bounds = array<i64: 2, 1, 64>}, {pipeline_mode = #tpu.pipeline_mode<synchronous>, transform_indices = @transform_9, window_bounds = array<i64: 2, 64, 32>}, {pipeline_mode = #tpu.pipeline_mode<synchronous>, transform_indices = @transform_10, window_bounds = array<i64: 2, 6, 32>}, {pipeline_mode = #tpu.pipeline_mode<synchronous>, transform_indices = @transform_11, window_bounds = array<i64: 32, 32>}, {pipeline_mode = #tpu.pipeline_mode<synchronous>, transform_indices = @transform_12, window_bounds = array<i64: 1, 32>}, {pipeline_mode = #tpu.pipeline_mode<synchronous>, transform_indices = @transform_13, window_bounds = array<i64: 32, 128>}, {pipeline_mode = #tpu.pipeline_mode<synchronous>, transform_indices = @transform_14, window_bounds = array<i64: 1, 128>}, {pipeline_mode = #tpu.pipeline_mode<synchronous>, transform_indices = @transform_15, window_bounds = array<i64: 32, 32>}, {pipeline_mode = #tpu.pipeline_mode<synchronous>, transform_indices = @transform_16, window_bounds = array<i64: 1, 32>}, {pipeline_mode = #tpu.pipeline_mode<synchronous>, transform_indices = @transform_17, window_bounds = array<i64: 1, 32>}, {pipeline_mode = #tpu.pipeline_mode<synchronous>, transform_indices = @transform_18, window_bounds = array<i64: 1, 32>}, {pipeline_mode = #tpu.pipeline_mode<synchronous>, transform_indices = @transform_19, window_bounds = array<i64: 32, 128>}, {pipeline_mode = #tpu.pipeline_mode<synchronous>, transform_indices = @transform_20, window_bounds = array<i64: 1, 128>}, {transform_indices = @transform_21, window_bounds = array<i64: 8, 128>}, {transform_indices = @transform_22, window_bounds = array<i64: 8, 128>}]} {
    %c0 = arith.constant 0 : index
    %c0_0 = arith.constant 0 : index
    %c0_1 = arith.constant 0 : index
    %0 = vector.load %arg2[%c0, %c0_0, %c0_1] : memref<1x1x8xf32, #tpu.memory_space<vmem>>, vector<1x1x8xf32>
    %c0_2 = arith.constant 0 : index
    %c0_3 = arith.constant 0 : index
    %1 = vector.load %arg1[%c0_2, %c0_3] : memref<8x32xf32, #tpu.memory_space<vmem>>, vector<8x32xf32>
    %c0_4 = arith.constant 0 : index
    %c0_5 = arith.constant 0 : index
    %2 = vector.load %arg3[%c0_4, %c0_5] : memref<1x32xf32, #tpu.memory_space<vmem>>, vector<1x32xf32>
    %c0_6 = arith.constant 0 : index
    %c0_7 = arith.constant 0 : index
    %3 = vector.load %arg4[%c0_6, %c0_7] : memref<1x32xf32, #tpu.memory_space<vmem>>, vector<1x32xf32>
    %cst = arith.constant dense<0.000000e+00> : vector<8xf32>
    %4 = vector.multi_reduction <add>, %1, %cst [1] : vector<8x32xf32> to vector<8xf32>
    %5 = vector.shape_cast %4 : vector<8xf32> to vector<8x1xf32>
    %cst_8 = arith.constant 3.200000e+01 : f32
    %6 = vector.broadcast %cst_8 : f32 to vector<8x1xf32>
    %7 = arith.divf %5, %6 : vector<8x1xf32>
    %8 = vector.broadcast %7 : vector<8x1xf32> to vector<8x32xf32>
    %9 = arith.subf %1, %8 : vector<8x32xf32>
    %10 = arith.mulf %9, %9 : vector<8x32xf32>
    %cst_9 = arith.constant dense<0.000000e+00> : vector<8xf32>
    %11 = vector.multi_reduction <add>, %10, %cst_9 [1] : vector<8x32xf32> to vector<8xf32>
    %12 = vector.shape_cast %11 : vector<8xf32> to vector<8x1xf32>
    %cst_10 = arith.constant 3.200000e+01 : f32
    %13 = vector.broadcast %cst_10 : f32 to vector<8x1xf32>
    %14 = arith.divf %12, %13 : vector<8x1xf32>
    %15 = vector.broadcast %7 : vector<8x1xf32> to vector<8x32xf32>
    %16 = arith.subf %1, %15 : vector<8x32xf32>
    %cst_11 = arith.constant 9.99999996E-13 : f32
    %17 = vector.broadcast %cst_11 : f32 to vector<8x1xf32>
    %18 = arith.addf %14, %17 : vector<8x1xf32>
    %19 = math.rsqrt %18 : vector<8x1xf32>
    %20 = vector.broadcast %19 : vector<8x1xf32> to vector<8x32xf32>
    %21 = arith.mulf %16, %20 : vector<8x32xf32>
    %22 = vector.broadcast %2 : vector<1x32xf32> to vector<8x32xf32>
    %23 = arith.mulf %21, %22 : vector<8x32xf32>
    %24 = vector.broadcast %3 : vector<1x32xf32> to vector<8x32xf32>
    %25 = arith.addf %23, %24 : vector<8x32xf32>
    %c0_12 = arith.constant 0 : index
    %c0_13 = arith.constant 0 : index
    %c0_14 = arith.constant 0 : index
    %26 = vector.load %arg11[%c0_12, %c0_13, %c0_14] : memref<2x6x32xf32, #tpu.memory_space<vmem>>, vector<1x6x32xf32>
    %27 = vector.shape_cast %26 : vector<1x6x32xf32> to vector<6x32xf32>
    %28 = vector.extract_strided_slice %27 {offsets = [0, 0], sizes = [1, 32], strides = [1, 1]} : vector<6x32xf32> to vector<1x32xf32>
    %29 = vector.extract_strided_slice %27 {offsets = [1, 0], sizes = [1, 32], strides = [1, 1]} : vector<6x32xf32> to vector<1x32xf32>
    %30 = vector.extract_strided_slice %27 {offsets = [2, 0], sizes = [1, 32], strides = [1, 1]} : vector<6x32xf32> to vector<1x32xf32>
    %31 = vector.extract_strided_slice %27 {offsets = [3, 0], sizes = [1, 32], strides = [1, 1]} : vector<6x32xf32> to vector<1x32xf32>
    %32 = vector.extract_strided_slice %27 {offsets = [4, 0], sizes = [1, 32], strides = [1, 1]} : vector<6x32xf32> to vector<1x32xf32>
    %33 = vector.extract_strided_slice %27 {offsets = [5, 0], sizes = [1, 32], strides = [1, 1]} : vector<6x32xf32> to vector<1x32xf32>
    %34 = arith.truncf %25 : vector<8x32xf32> to vector<8x32xbf16>
    %c0_15 = arith.constant 0 : index
    %c0_16 = arith.constant 0 : index
    %c0_17 = arith.constant 0 : index
    %35 = vector.load %arg5[%c0_15, %c0_16, %c0_17] : memref<2x32x96xbf16, #tpu.memory_space<vmem>>, vector<1x32x96xbf16>
    %36 = vector.shape_cast %35 : vector<1x32x96xbf16> to vector<32x96xbf16>
    %cst_18 = arith.constant dense<0.000000e+00> : vector<8x96xf32>
    %37 = tpu.matmul %34, %36, %cst_18 {dimension_numbers = #tpu.dot_dimension_numbers<[1], [0], [0], [1], [0, 0, 1, 1], [], []>} : vector<8x32xbf16>, vector<32x96xbf16>, vector<8x96xf32> -> vector<8x96xf32>
    %c0_19 = arith.constant 0 : index
    %c0_20 = arith.constant 0 : index
    %c0_21 = arith.constant 0 : index
    %38 = vector.load %arg6[%c0_19, %c0_20, %c0_21] : memref<2x1x96xf32, #tpu.memory_space<vmem>>, vector<1x1x96xf32>
    %39 = vector.shape_cast %38 : vector<1x1x96xf32> to vector<1x96xf32>
    %40 = vector.broadcast %39 : vector<1x96xf32> to vector<8x96xf32>
    %41 = arith.addf %37, %40 : vector<8x96xf32>
    %42 = tpu.transpose %41, [1, 0] : vector<8x96xf32> -> vector<96x8xf32>
    %43 = vector.extract_strided_slice %42 {offsets = [0, 0], sizes = [32, 8], strides = [1, 1]} : vector<96x8xf32> to vector<32x8xf32>
    %44 = vector.shape_cast %43 : vector<32x8xf32> to vector<4x8x8xf32>
    %45 = tpu.transpose %44, [0, 2, 1] : vector<4x8x8xf32> -> vector<4x8x8xf32>
    %46 = vector.extract_strided_slice %42 {offsets = [32, 0], sizes = [32, 8], strides = [1, 1]} : vector<96x8xf32> to vector<32x8xf32>
    %47 = vector.shape_cast %46 : vector<32x8xf32> to vector<4x8x8xf32>
    %48 = vector.extract_strided_slice %42 {offsets = [64, 0], sizes = [32, 8], strides = [1, 1]} : vector<96x8xf32> to vector<32x8xf32>
    %49 = vector.shape_cast %48 : vector<32x8xf32> to vector<4x8x8xf32>
    %50 = arith.truncf %45 : vector<4x8x8xf32> to vector<4x8x8xbf16>
    %51 = arith.truncf %47 : vector<4x8x8xf32> to vector<4x8x8xbf16>
    "tpu.trace_start"() <{level = 10 : i32, message = "hqd,hdk->hqk"}> : () -> ()
    %cst_22 = arith.constant dense<0.000000e+00> : vector<4x8x8xf32>
    %52 = tpu.matmul %50, %51, %cst_22 {dimension_numbers = #tpu.dot_dimension_numbers<[2], [1], [1], [2], [0, 0, 0, 1, 1, 2], [0], [0]>} : vector<4x8x8xbf16>, vector<4x8x8xbf16>, vector<4x8x8xf32> -> vector<4x8x8xf32>
    "tpu.trace_stop"() : () -> ()
    %cst_23 = arith.constant 0.353553385 : f32
    %53 = vector.broadcast %cst_23 : f32 to vector<4x8x8xf32>
    %54 = arith.mulf %52, %53 : vector<4x8x8xf32>
    %55 = vector.broadcast %0 : vector<1x1x8xf32> to vector<4x8x8xf32>
    %56 = arith.addf %54, %55 : vector<4x8x8xf32>
    %cst_24 = arith.constant dense<0xFF800000> : vector<4x8xf32>
    %57 = vector.multi_reduction <maximumf>, %56, %cst_24 [2] : vector<4x8x8xf32> to vector<4x8xf32>
    %58 = vector.shape_cast %57 : vector<4x8xf32> to vector<4x8x1xf32>
    %59 = vector.broadcast %58 : vector<4x8x1xf32> to vector<4x8x8xf32>
    %60 = arith.subf %56, %59 : vector<4x8x8xf32>
    %61 = math.exp %60 : vector<4x8x8xf32>
    %cst_25 = arith.constant dense<0.000000e+00> : vector<4x8xf32>
    %62 = vector.multi_reduction <add>, %61, %cst_25 [2] : vector<4x8x8xf32> to vector<4x8xf32>
    %63 = vector.shape_cast %62 : vector<4x8xf32> to vector<4x8x1xf32>
    %64 = tpu.reciprocal %63 {approx = true} : vector<4x8x1xf32> -> vector<4x8x1xf32>
    %65 = vector.broadcast %64 : vector<4x8x1xf32> to vector<4x8x8xf32>
    %66 = arith.mulf %61, %65 : vector<4x8x8xf32>
    %67 = arith.truncf %49 : vector<4x8x8xf32> to vector<4x8x8xbf16>
    %68 = arith.truncf %66 : vector<4x8x8xf32> to vector<4x8x8xbf16>
    "tpu.trace_start"() <{level = 10 : i32, message = "hdk,hqk->hdq"}> : () -> ()
    %cst_26 = arith.constant dense<0.000000e+00> : vector<4x8x8xf32>
    %69 = tpu.matmul %67, %68, %cst_26 {dimension_numbers = #tpu.dot_dimension_numbers<[2], [2], [1], [1], [0, 0, 0, 1, 1, 1], [0], [0]>} : vector<4x8x8xbf16>, vector<4x8x8xbf16>, vector<4x8x8xf32> -> vector<4x8x8xf32>
    "tpu.trace_stop"() : () -> ()
    %70 = vector.shape_cast %69 : vector<4x8x8xf32> to vector<32x8xf32>
    %71 = tpu.transpose %70, [1, 0] : vector<32x8xf32> -> vector<8x32xf32>
    %72 = arith.truncf %71 : vector<8x32xf32> to vector<8x32xbf16>
    %c0_27 = arith.constant 0 : index
    %c0_28 = arith.constant 0 : index
    %c0_29 = arith.constant 0 : index
    %73 = vector.load %arg7[%c0_27, %c0_28, %c0_29] : memref<2x32x32xbf16, #tpu.memory_space<vmem>>, vector<1x32x32xbf16>
    %74 = vector.shape_cast %73 : vector<1x32x32xbf16> to vector<32x32xbf16>
    %cst_30 = arith.constant dense<0.000000e+00> : vector<8x32xf32>
    %75 = tpu.matmul %72, %74, %cst_30 {dimension_numbers = #tpu.dot_dimension_numbers<[1], [0], [0], [1], [0, 0, 1, 1], [], []>} : vector<8x32xbf16>, vector<32x32xbf16>, vector<8x32xf32> -> vector<8x32xf32>
    %76 = vector.broadcast %28 : vector<1x32xf32> to vector<8x32xf32>
    %77 = arith.addf %75, %76 : vector<8x32xf32>
    %78 = arith.addf %25, %77 : vector<8x32xf32>
    %cst_31 = arith.constant dense<0.000000e+00> : vector<8xf32>
    %79 = vector.multi_reduction <add>, %78, %cst_31 [1] : vector<8x32xf32> to vector<8xf32>
    %80 = vector.shape_cast %79 : vector<8xf32> to vector<8x1xf32>
    %cst_32 = arith.constant 3.200000e+01 : f32
    %81 = vector.broadcast %cst_32 : f32 to vector<8x1xf32>
    %82 = arith.divf %80, %81 : vector<8x1xf32>
    %83 = vector.broadcast %82 : vector<8x1xf32> to vector<8x32xf32>
    %84 = arith.subf %78, %83 : vector<8x32xf32>
    %85 = arith.mulf %84, %84 : vector<8x32xf32>
    %cst_33 = arith.constant dense<0.000000e+00> : vector<8xf32>
    %86 = vector.multi_reduction <add>, %85, %cst_33 [1] : vector<8x32xf32> to vector<8xf32>
    %87 = vector.shape_cast %86 : vector<8xf32> to vector<8x1xf32>
    %cst_34 = arith.constant 3.200000e+01 : f32
    %88 = vector.broadcast %cst_34 : f32 to vector<8x1xf32>
    %89 = arith.divf %87, %88 : vector<8x1xf32>
    %90 = vector.broadcast %82 : vector<8x1xf32> to vector<8x32xf32>
    %91 = arith.subf %78, %90 : vector<8x32xf32>
    %cst_35 = arith.constant 9.99999996E-13 : f32
    %92 = vector.broadcast %cst_35 : f32 to vector<8x1xf32>
    %93 = arith.addf %89, %92 : vector<8x1xf32>
    %94 = math.rsqrt %93 : vector<8x1xf32>
    %95 = vector.broadcast %94 : vector<8x1xf32> to vector<8x32xf32>
    %96 = arith.mulf %91, %95 : vector<8x32xf32>
    %97 = vector.broadcast %29 : vector<1x32xf32> to vector<8x32xf32>
    %98 = arith.mulf %96, %97 : vector<8x32xf32>
    %99 = vector.broadcast %30 : vector<1x32xf32> to vector<8x32xf32>
    %100 = arith.addf %98, %99 : vector<8x32xf32>
    %101 = arith.truncf %100 : vector<8x32xf32> to vector<8x32xbf16>
    %c0_36 = arith.constant 0 : index
    %c0_37 = arith.constant 0 : index
    %c0_38 = arith.constant 0 : index
    %102 = vector.load %arg8[%c0_36, %c0_37, %c0_38] : memref<2x32x64xbf16, #tpu.memory_space<vmem>>, vector<1x32x64xbf16>
    %103 = vector.shape_cast %102 : vector<1x32x64xbf16> to vector<32x64xbf16>
    %cst_39 = arith.constant dense<0.000000e+00> : vector<8x64xf32>
    %104 = tpu.matmul %101, %103, %cst_39 {dimension_numbers = #tpu.dot_dimension_numbers<[1], [0], [0], [1], [0, 0, 1, 1], [], []>} : vector<8x32xbf16>, vector<32x64xbf16>, vector<8x64xf32> -> vector<8x64xf32>
    %c0_40 = arith.constant 0 : index
    %c0_41 = arith.constant 0 : index
    %c0_42 = arith.constant 0 : index
    %105 = vector.load %arg9[%c0_40, %c0_41, %c0_42] : memref<2x1x64xf32, #tpu.memory_space<vmem>>, vector<1x1x64xf32>
    %106 = vector.shape_cast %105 : vector<1x1x64xf32> to vector<1x64xf32>
    %107 = vector.broadcast %106 : vector<1x64xf32> to vector<8x64xf32>
    %108 = arith.addf %104, %107 : vector<8x64xf32>
    %cst_43 = arith.constant 5.000000e-01 : f32
    %109 = vector.broadcast %cst_43 : f32 to vector<8x64xf32>
    %110 = arith.mulf %108, %109 : vector<8x64xf32>
    %cst_44 = arith.constant 0.707106769 : f32
    %111 = vector.broadcast %cst_44 : f32 to vector<8x64xf32>
    %112 = arith.mulf %108, %111 : vector<8x64xf32>
    %113 = math.erf %112 : vector<8x64xf32>
    %cst_45 = arith.constant 1.000000e+00 : f32
    %114 = vector.broadcast %cst_45 : f32 to vector<8x64xf32>
    %115 = arith.addf %114, %113 : vector<8x64xf32>
    %116 = arith.mulf %110, %115 : vector<8x64xf32>
    %117 = arith.truncf %116 : vector<8x64xf32> to vector<8x64xbf16>
    %c0_46 = arith.constant 0 : index
    %c0_47 = arith.constant 0 : index
    %c0_48 = arith.constant 0 : index
    %118 = vector.load %arg10[%c0_46, %c0_47, %c0_48] : memref<2x64x32xbf16, #tpu.memory_space<vmem>>, vector<1x64x32xbf16>
    %119 = vector.shape_cast %118 : vector<1x64x32xbf16> to vector<64x32xbf16>
    %cst_49 = arith.constant dense<0.000000e+00> : vector<8x32xf32>
    %120 = tpu.matmul %117, %119, %cst_49 {dimension_numbers = #tpu.dot_dimension_numbers<[1], [0], [0], [1], [0, 0, 1, 1], [], []>} : vector<8x64xbf16>, vector<64x32xbf16>, vector<8x32xf32> -> vector<8x32xf32>
    %121 = vector.broadcast %31 : vector<1x32xf32> to vector<8x32xf32>
    %122 = arith.addf %120, %121 : vector<8x32xf32>
    %123 = arith.addf %100, %122 : vector<8x32xf32>
    %cst_50 = arith.constant dense<0.000000e+00> : vector<8xf32>
    %124 = vector.multi_reduction <add>, %123, %cst_50 [1] : vector<8x32xf32> to vector<8xf32>
    %125 = vector.shape_cast %124 : vector<8xf32> to vector<8x1xf32>
    %cst_51 = arith.constant 3.200000e+01 : f32
    %126 = vector.broadcast %cst_51 : f32 to vector<8x1xf32>
    %127 = arith.divf %125, %126 : vector<8x1xf32>
    %128 = vector.broadcast %127 : vector<8x1xf32> to vector<8x32xf32>
    %129 = arith.subf %123, %128 : vector<8x32xf32>
    %130 = arith.mulf %129, %129 : vector<8x32xf32>
    %cst_52 = arith.constant dense<0.000000e+00> : vector<8xf32>
    %131 = vector.multi_reduction <add>, %130, %cst_52 [1] : vector<8x32xf32> to vector<8xf32>
    %132 = vector.shape_cast %131 : vector<8xf32> to vector<8x1xf32>
    %cst_53 = arith.constant 3.200000e+01 : f32
    %133 = vector.broadcast %cst_53 : f32 to vector<8x1xf32>
    %134 = arith.divf %132, %133 : vector<8x1xf32>
    %135 = vector.broadcast %127 : vector<8x1xf32> to vector<8x32xf32>
    %136 = arith.subf %123, %135 : vector<8x32xf32>
    %cst_54 = arith.constant 9.99999996E-13 : f32
    %137 = vector.broadcast %cst_54 : f32 to vector<8x1xf32>
    %138 = arith.addf %134, %137 : vector<8x1xf32>
    %139 = math.rsqrt %138 : vector<8x1xf32>
    %140 = vector.broadcast %139 : vector<8x1xf32> to vector<8x32xf32>
    %141 = arith.mulf %136, %140 : vector<8x32xf32>
    %142 = vector.broadcast %32 : vector<1x32xf32> to vector<8x32xf32>
    %143 = arith.mulf %141, %142 : vector<8x32xf32>
    %144 = vector.broadcast %33 : vector<1x32xf32> to vector<8x32xf32>
    %145 = arith.addf %143, %144 : vector<8x32xf32>
    %c1 = arith.constant 1 : index
    %c0_55 = arith.constant 0 : index
    %c0_56 = arith.constant 0 : index
    %146 = vector.load %arg11[%c1, %c0_55, %c0_56] : memref<2x6x32xf32, #tpu.memory_space<vmem>>, vector<1x6x32xf32>
    %147 = vector.shape_cast %146 : vector<1x6x32xf32> to vector<6x32xf32>
    %148 = vector.extract_strided_slice %147 {offsets = [0, 0], sizes = [1, 32], strides = [1, 1]} : vector<6x32xf32> to vector<1x32xf32>
    %149 = vector.extract_strided_slice %147 {offsets = [1, 0], sizes = [1, 32], strides = [1, 1]} : vector<6x32xf32> to vector<1x32xf32>
    %150 = vector.extract_strided_slice %147 {offsets = [2, 0], sizes = [1, 32], strides = [1, 1]} : vector<6x32xf32> to vector<1x32xf32>
    %151 = vector.extract_strided_slice %147 {offsets = [3, 0], sizes = [1, 32], strides = [1, 1]} : vector<6x32xf32> to vector<1x32xf32>
    %152 = vector.extract_strided_slice %147 {offsets = [4, 0], sizes = [1, 32], strides = [1, 1]} : vector<6x32xf32> to vector<1x32xf32>
    %153 = vector.extract_strided_slice %147 {offsets = [5, 0], sizes = [1, 32], strides = [1, 1]} : vector<6x32xf32> to vector<1x32xf32>
    %154 = arith.truncf %145 : vector<8x32xf32> to vector<8x32xbf16>
    %c1_57 = arith.constant 1 : index
    %c0_58 = arith.constant 0 : index
    %c0_59 = arith.constant 0 : index
    %155 = vector.load %arg5[%c1_57, %c0_58, %c0_59] : memref<2x32x96xbf16, #tpu.memory_space<vmem>>, vector<1x32x96xbf16>
    %156 = vector.shape_cast %155 : vector<1x32x96xbf16> to vector<32x96xbf16>
    %cst_60 = arith.constant dense<0.000000e+00> : vector<8x96xf32>
    %157 = tpu.matmul %154, %156, %cst_60 {dimension_numbers = #tpu.dot_dimension_numbers<[1], [0], [0], [1], [0, 0, 1, 1], [], []>} : vector<8x32xbf16>, vector<32x96xbf16>, vector<8x96xf32> -> vector<8x96xf32>
    %c1_61 = arith.constant 1 : index
    %c0_62 = arith.constant 0 : index
    %c0_63 = arith.constant 0 : index
    %158 = vector.load %arg6[%c1_61, %c0_62, %c0_63] : memref<2x1x96xf32, #tpu.memory_space<vmem>>, vector<1x1x96xf32>
    %159 = vector.shape_cast %158 : vector<1x1x96xf32> to vector<1x96xf32>
    %160 = vector.broadcast %159 : vector<1x96xf32> to vector<8x96xf32>
    %161 = arith.addf %157, %160 : vector<8x96xf32>
    %162 = tpu.transpose %161, [1, 0] : vector<8x96xf32> -> vector<96x8xf32>
    %163 = vector.extract_strided_slice %162 {offsets = [0, 0], sizes = [32, 8], strides = [1, 1]} : vector<96x8xf32> to vector<32x8xf32>
    %164 = vector.shape_cast %163 : vector<32x8xf32> to vector<4x8x8xf32>
    %165 = tpu.transpose %164, [0, 2, 1] : vector<4x8x8xf32> -> vector<4x8x8xf32>
    %166 = vector.extract_strided_slice %162 {offsets = [32, 0], sizes = [32, 8], strides = [1, 1]} : vector<96x8xf32> to vector<32x8xf32>
    %167 = vector.shape_cast %166 : vector<32x8xf32> to vector<4x8x8xf32>
    %168 = vector.extract_strided_slice %162 {offsets = [64, 0], sizes = [32, 8], strides = [1, 1]} : vector<96x8xf32> to vector<32x8xf32>
    %169 = vector.shape_cast %168 : vector<32x8xf32> to vector<4x8x8xf32>
    %170 = arith.truncf %165 : vector<4x8x8xf32> to vector<4x8x8xbf16>
    %171 = arith.truncf %167 : vector<4x8x8xf32> to vector<4x8x8xbf16>
    "tpu.trace_start"() <{level = 10 : i32, message = "hqd,hdk->hqk"}> : () -> ()
    %cst_64 = arith.constant dense<0.000000e+00> : vector<4x8x8xf32>
    %172 = tpu.matmul %170, %171, %cst_64 {dimension_numbers = #tpu.dot_dimension_numbers<[2], [1], [1], [2], [0, 0, 0, 1, 1, 2], [0], [0]>} : vector<4x8x8xbf16>, vector<4x8x8xbf16>, vector<4x8x8xf32> -> vector<4x8x8xf32>
    "tpu.trace_stop"() : () -> ()
    %cst_65 = arith.constant 0.353553385 : f32
    %173 = vector.broadcast %cst_65 : f32 to vector<4x8x8xf32>
    %174 = arith.mulf %172, %173 : vector<4x8x8xf32>
    %175 = vector.broadcast %0 : vector<1x1x8xf32> to vector<4x8x8xf32>
    %176 = arith.addf %174, %175 : vector<4x8x8xf32>
    %cst_66 = arith.constant dense<0xFF800000> : vector<4x8xf32>
    %177 = vector.multi_reduction <maximumf>, %176, %cst_66 [2] : vector<4x8x8xf32> to vector<4x8xf32>
    %178 = vector.shape_cast %177 : vector<4x8xf32> to vector<4x8x1xf32>
    %179 = vector.broadcast %178 : vector<4x8x1xf32> to vector<4x8x8xf32>
    %180 = arith.subf %176, %179 : vector<4x8x8xf32>
    %181 = math.exp %180 : vector<4x8x8xf32>
    %cst_67 = arith.constant dense<0.000000e+00> : vector<4x8xf32>
    %182 = vector.multi_reduction <add>, %181, %cst_67 [2] : vector<4x8x8xf32> to vector<4x8xf32>
    %183 = vector.shape_cast %182 : vector<4x8xf32> to vector<4x8x1xf32>
    %184 = tpu.reciprocal %183 {approx = true} : vector<4x8x1xf32> -> vector<4x8x1xf32>
    %185 = vector.broadcast %184 : vector<4x8x1xf32> to vector<4x8x8xf32>
    %186 = arith.mulf %181, %185 : vector<4x8x8xf32>
    %187 = arith.truncf %169 : vector<4x8x8xf32> to vector<4x8x8xbf16>
    %188 = arith.truncf %186 : vector<4x8x8xf32> to vector<4x8x8xbf16>
    "tpu.trace_start"() <{level = 10 : i32, message = "hdk,hqk->hdq"}> : () -> ()
    %cst_68 = arith.constant dense<0.000000e+00> : vector<4x8x8xf32>
    %189 = tpu.matmul %187, %188, %cst_68 {dimension_numbers = #tpu.dot_dimension_numbers<[2], [2], [1], [1], [0, 0, 0, 1, 1, 1], [0], [0]>} : vector<4x8x8xbf16>, vector<4x8x8xbf16>, vector<4x8x8xf32> -> vector<4x8x8xf32>
    "tpu.trace_stop"() : () -> ()
    %190 = vector.shape_cast %189 : vector<4x8x8xf32> to vector<32x8xf32>
    %191 = tpu.transpose %190, [1, 0] : vector<32x8xf32> -> vector<8x32xf32>
    %192 = arith.truncf %191 : vector<8x32xf32> to vector<8x32xbf16>
    %c1_69 = arith.constant 1 : index
    %c0_70 = arith.constant 0 : index
    %c0_71 = arith.constant 0 : index
    %193 = vector.load %arg7[%c1_69, %c0_70, %c0_71] : memref<2x32x32xbf16, #tpu.memory_space<vmem>>, vector<1x32x32xbf16>
    %194 = vector.shape_cast %193 : vector<1x32x32xbf16> to vector<32x32xbf16>
    %cst_72 = arith.constant dense<0.000000e+00> : vector<8x32xf32>
    %195 = tpu.matmul %192, %194, %cst_72 {dimension_numbers = #tpu.dot_dimension_numbers<[1], [0], [0], [1], [0, 0, 1, 1], [], []>} : vector<8x32xbf16>, vector<32x32xbf16>, vector<8x32xf32> -> vector<8x32xf32>
    %196 = vector.broadcast %148 : vector<1x32xf32> to vector<8x32xf32>
    %197 = arith.addf %195, %196 : vector<8x32xf32>
    %198 = arith.addf %145, %197 : vector<8x32xf32>
    %cst_73 = arith.constant dense<0.000000e+00> : vector<8xf32>
    %199 = vector.multi_reduction <add>, %198, %cst_73 [1] : vector<8x32xf32> to vector<8xf32>
    %200 = vector.shape_cast %199 : vector<8xf32> to vector<8x1xf32>
    %cst_74 = arith.constant 3.200000e+01 : f32
    %201 = vector.broadcast %cst_74 : f32 to vector<8x1xf32>
    %202 = arith.divf %200, %201 : vector<8x1xf32>
    %203 = vector.broadcast %202 : vector<8x1xf32> to vector<8x32xf32>
    %204 = arith.subf %198, %203 : vector<8x32xf32>
    %205 = arith.mulf %204, %204 : vector<8x32xf32>
    %cst_75 = arith.constant dense<0.000000e+00> : vector<8xf32>
    %206 = vector.multi_reduction <add>, %205, %cst_75 [1] : vector<8x32xf32> to vector<8xf32>
    %207 = vector.shape_cast %206 : vector<8xf32> to vector<8x1xf32>
    %cst_76 = arith.constant 3.200000e+01 : f32
    %208 = vector.broadcast %cst_76 : f32 to vector<8x1xf32>
    %209 = arith.divf %207, %208 : vector<8x1xf32>
    %210 = vector.broadcast %202 : vector<8x1xf32> to vector<8x32xf32>
    %211 = arith.subf %198, %210 : vector<8x32xf32>
    %cst_77 = arith.constant 9.99999996E-13 : f32
    %212 = vector.broadcast %cst_77 : f32 to vector<8x1xf32>
    %213 = arith.addf %209, %212 : vector<8x1xf32>
    %214 = math.rsqrt %213 : vector<8x1xf32>
    %215 = vector.broadcast %214 : vector<8x1xf32> to vector<8x32xf32>
    %216 = arith.mulf %211, %215 : vector<8x32xf32>
    %217 = vector.broadcast %149 : vector<1x32xf32> to vector<8x32xf32>
    %218 = arith.mulf %216, %217 : vector<8x32xf32>
    %219 = vector.broadcast %150 : vector<1x32xf32> to vector<8x32xf32>
    %220 = arith.addf %218, %219 : vector<8x32xf32>
    %221 = arith.truncf %220 : vector<8x32xf32> to vector<8x32xbf16>
    %c1_78 = arith.constant 1 : index
    %c0_79 = arith.constant 0 : index
    %c0_80 = arith.constant 0 : index
    %222 = vector.load %arg8[%c1_78, %c0_79, %c0_80] : memref<2x32x64xbf16, #tpu.memory_space<vmem>>, vector<1x32x64xbf16>
    %223 = vector.shape_cast %222 : vector<1x32x64xbf16> to vector<32x64xbf16>
    %cst_81 = arith.constant dense<0.000000e+00> : vector<8x64xf32>
    %224 = tpu.matmul %221, %223, %cst_81 {dimension_numbers = #tpu.dot_dimension_numbers<[1], [0], [0], [1], [0, 0, 1, 1], [], []>} : vector<8x32xbf16>, vector<32x64xbf16>, vector<8x64xf32> -> vector<8x64xf32>
    %c1_82 = arith.constant 1 : index
    %c0_83 = arith.constant 0 : index
    %c0_84 = arith.constant 0 : index
    %225 = vector.load %arg9[%c1_82, %c0_83, %c0_84] : memref<2x1x64xf32, #tpu.memory_space<vmem>>, vector<1x1x64xf32>
    %226 = vector.shape_cast %225 : vector<1x1x64xf32> to vector<1x64xf32>
    %227 = vector.broadcast %226 : vector<1x64xf32> to vector<8x64xf32>
    %228 = arith.addf %224, %227 : vector<8x64xf32>
    %cst_85 = arith.constant 5.000000e-01 : f32
    %229 = vector.broadcast %cst_85 : f32 to vector<8x64xf32>
    %230 = arith.mulf %228, %229 : vector<8x64xf32>
    %cst_86 = arith.constant 0.707106769 : f32
    %231 = vector.broadcast %cst_86 : f32 to vector<8x64xf32>
    %232 = arith.mulf %228, %231 : vector<8x64xf32>
    %233 = math.erf %232 : vector<8x64xf32>
    %cst_87 = arith.constant 1.000000e+00 : f32
    %234 = vector.broadcast %cst_87 : f32 to vector<8x64xf32>
    %235 = arith.addf %234, %233 : vector<8x64xf32>
    %236 = arith.mulf %230, %235 : vector<8x64xf32>
    %237 = arith.truncf %236 : vector<8x64xf32> to vector<8x64xbf16>
    %c1_88 = arith.constant 1 : index
    %c0_89 = arith.constant 0 : index
    %c0_90 = arith.constant 0 : index
    %238 = vector.load %arg10[%c1_88, %c0_89, %c0_90] : memref<2x64x32xbf16, #tpu.memory_space<vmem>>, vector<1x64x32xbf16>
    %239 = vector.shape_cast %238 : vector<1x64x32xbf16> to vector<64x32xbf16>
    %cst_91 = arith.constant dense<0.000000e+00> : vector<8x32xf32>
    %240 = tpu.matmul %237, %239, %cst_91 {dimension_numbers = #tpu.dot_dimension_numbers<[1], [0], [0], [1], [0, 0, 1, 1], [], []>} : vector<8x64xbf16>, vector<64x32xbf16>, vector<8x32xf32> -> vector<8x32xf32>
    %241 = vector.broadcast %151 : vector<1x32xf32> to vector<8x32xf32>
    %242 = arith.addf %240, %241 : vector<8x32xf32>
    %243 = arith.addf %220, %242 : vector<8x32xf32>
    %cst_92 = arith.constant dense<0.000000e+00> : vector<8xf32>
    %244 = vector.multi_reduction <add>, %243, %cst_92 [1] : vector<8x32xf32> to vector<8xf32>
    %245 = vector.shape_cast %244 : vector<8xf32> to vector<8x1xf32>
    %cst_93 = arith.constant 3.200000e+01 : f32
    %246 = vector.broadcast %cst_93 : f32 to vector<8x1xf32>
    %247 = arith.divf %245, %246 : vector<8x1xf32>
    %248 = vector.broadcast %247 : vector<8x1xf32> to vector<8x32xf32>
    %249 = arith.subf %243, %248 : vector<8x32xf32>
    %250 = arith.mulf %249, %249 : vector<8x32xf32>
    %cst_94 = arith.constant dense<0.000000e+00> : vector<8xf32>
    %251 = vector.multi_reduction <add>, %250, %cst_94 [1] : vector<8x32xf32> to vector<8xf32>
    %252 = vector.shape_cast %251 : vector<8xf32> to vector<8x1xf32>
    %cst_95 = arith.constant 3.200000e+01 : f32
    %253 = vector.broadcast %cst_95 : f32 to vector<8x1xf32>
    %254 = arith.divf %252, %253 : vector<8x1xf32>
    %255 = vector.broadcast %247 : vector<8x1xf32> to vector<8x32xf32>
    %256 = arith.subf %243, %255 : vector<8x32xf32>
    %cst_96 = arith.constant 9.99999996E-13 : f32
    %257 = vector.broadcast %cst_96 : f32 to vector<8x1xf32>
    %258 = arith.addf %254, %257 : vector<8x1xf32>
    %259 = math.rsqrt %258 : vector<8x1xf32>
    %260 = vector.broadcast %259 : vector<8x1xf32> to vector<8x32xf32>
    %261 = arith.mulf %256, %260 : vector<8x32xf32>
    %262 = vector.broadcast %152 : vector<1x32xf32> to vector<8x32xf32>
    %263 = arith.mulf %261, %262 : vector<8x32xf32>
    %264 = vector.broadcast %153 : vector<1x32xf32> to vector<8x32xf32>
    %265 = arith.addf %263, %264 : vector<8x32xf32>
    %266 = arith.truncf %265 : vector<8x32xf32> to vector<8x32xbf16>
    %c0_97 = arith.constant 0 : index
    %c0_98 = arith.constant 0 : index
    %267 = vector.load %arg16[%c0_97, %c0_98] : memref<32x32xbf16, #tpu.memory_space<vmem>>, vector<32x32xbf16>
    %cst_99 = arith.constant dense<0.000000e+00> : vector<8x32xf32>
    %268 = tpu.matmul %266, %267, %cst_99 {dimension_numbers = #tpu.dot_dimension_numbers<[1], [0], [0], [1], [0, 0, 1, 1], [], []>} : vector<8x32xbf16>, vector<32x32xbf16>, vector<8x32xf32> -> vector<8x32xf32>
    %c0_100 = arith.constant 0 : index
    %c0_101 = arith.constant 0 : index
    %269 = vector.load %arg17[%c0_100, %c0_101] : memref<1x32xf32, #tpu.memory_space<vmem>>, vector<1x32xf32>
    %270 = vector.broadcast %269 : vector<1x32xf32> to vector<8x32xf32>
    %271 = arith.addf %268, %270 : vector<8x32xf32>
    %cst_102 = arith.constant 5.000000e-01 : f32
    %272 = vector.broadcast %cst_102 : f32 to vector<8x32xf32>
    %273 = arith.mulf %271, %272 : vector<8x32xf32>
    %cst_103 = arith.constant 0.707106769 : f32
    %274 = vector.broadcast %cst_103 : f32 to vector<8x32xf32>
    %275 = arith.mulf %271, %274 : vector<8x32xf32>
    %276 = math.erf %275 : vector<8x32xf32>
    %cst_104 = arith.constant 1.000000e+00 : f32
    %277 = vector.broadcast %cst_104 : f32 to vector<8x32xf32>
    %278 = arith.addf %277, %276 : vector<8x32xf32>
    %279 = arith.mulf %273, %278 : vector<8x32xf32>
    %c0_105 = arith.constant 0 : index
    %c0_106 = arith.constant 0 : index
    %280 = vector.load %arg18[%c0_105, %c0_106] : memref<1x32xf32, #tpu.memory_space<vmem>>, vector<1x32xf32>
    %c0_107 = arith.constant 0 : index
    %c0_108 = arith.constant 0 : index
    %281 = vector.load %arg19[%c0_107, %c0_108] : memref<1x32xf32, #tpu.memory_space<vmem>>, vector<1x32xf32>
    %cst_109 = arith.constant dense<0.000000e+00> : vector<8xf32>
    %282 = vector.multi_reduction <add>, %279, %cst_109 [1] : vector<8x32xf32> to vector<8xf32>
    %283 = vector.shape_cast %282 : vector<8xf32> to vector<8x1xf32>
    %cst_110 = arith.constant 3.200000e+01 : f32
    %284 = vector.broadcast %cst_110 : f32 to vector<8x1xf32>
    %285 = arith.divf %283, %284 : vector<8x1xf32>
    %286 = vector.broadcast %285 : vector<8x1xf32> to vector<8x32xf32>
    %287 = arith.subf %279, %286 : vector<8x32xf32>
    %288 = arith.mulf %287, %287 : vector<8x32xf32>
    %cst_111 = arith.constant dense<0.000000e+00> : vector<8xf32>
    %289 = vector.multi_reduction <add>, %288, %cst_111 [1] : vector<8x32xf32> to vector<8xf32>
    %290 = vector.shape_cast %289 : vector<8xf32> to vector<8x1xf32>
    %cst_112 = arith.constant 3.200000e+01 : f32
    %291 = vector.broadcast %cst_112 : f32 to vector<8x1xf32>
    %292 = arith.divf %290, %291 : vector<8x1xf32>
    %293 = vector.broadcast %285 : vector<8x1xf32> to vector<8x32xf32>
    %294 = arith.subf %279, %293 : vector<8x32xf32>
    %cst_113 = arith.constant 9.99999996E-13 : f32
    %295 = vector.broadcast %cst_113 : f32 to vector<8x1xf32>
    %296 = arith.addf %292, %295 : vector<8x1xf32>
    %297 = math.rsqrt %296 : vector<8x1xf32>
    %298 = vector.broadcast %297 : vector<8x1xf32> to vector<8x32xf32>
    %299 = arith.mulf %294, %298 : vector<8x32xf32>
    %300 = vector.broadcast %280 : vector<1x32xf32> to vector<8x32xf32>
    %301 = arith.mulf %299, %300 : vector<8x32xf32>
    %302 = vector.broadcast %281 : vector<1x32xf32> to vector<8x32xf32>
    %303 = arith.addf %301, %302 : vector<8x32xf32>
    %304 = arith.truncf %303 : vector<8x32xf32> to vector<8x32xbf16>
    %c0_114 = arith.constant 0 : index
    %c0_115 = arith.constant 0 : index
    %305 = vector.load %arg20[%c0_114, %c0_115] : memref<32x128xbf16, #tpu.memory_space<vmem>>, vector<32x128xbf16>
    %cst_116 = arith.constant dense<0.000000e+00> : vector<8x128xf32>
    %306 = tpu.matmul %304, %305, %cst_116 {dimension_numbers = #tpu.dot_dimension_numbers<[1], [0], [0], [1], [0, 0, 1, 1], [], []>} : vector<8x32xbf16>, vector<32x128xbf16>, vector<8x128xf32> -> vector<8x128xf32>
    %c0_117 = arith.constant 0 : index
    %c0_118 = arith.constant 0 : index
    %307 = vector.load %arg21[%c0_117, %c0_118] : memref<1x128xf32, #tpu.memory_space<vmem>>, vector<1x128xf32>
    %308 = vector.broadcast %307 : vector<1x128xf32> to vector<8x128xf32>
    %309 = arith.addf %306, %308 : vector<8x128xf32>
    %c0_119 = arith.constant 0 : index
    %c0_120 = arith.constant 0 : index
    %310 = vector.load %arg22[%c0_119, %c0_120] : memref<8x128xf32, #tpu.memory_space<vmem>>, vector<8x128xf32>
    tpu.vector_store %arg22[%c0_119, %c0_120], %309 {strides = array<i32>} : memref<8x128xf32, #tpu.memory_space<vmem>>, vector<8x128xf32>,
    %311 = vector.extract_strided_slice %265 {offsets = [0, 0], sizes = [1, 32], strides = [1, 1]} : vector<8x32xf32> to vector<1x32xf32>
    %312 = arith.truncf %311 : vector<1x32xf32> to vector<1x32xbf16>
    %c0_121 = arith.constant 0 : index
    %c0_122 = arith.constant 0 : index
    %313 = vector.load %arg12[%c0_121, %c0_122] : memref<32x32xbf16, #tpu.memory_space<vmem>>, vector<32x32xbf16>
    %cst_123 = arith.constant dense<0.000000e+00> : vector<1x32xf32>
    %314 = tpu.matmul %312, %313, %cst_123 {dimension_numbers = #tpu.dot_dimension_numbers<[1], [0], [0], [1], [0, 0, 1, 1], [], []>} : vector<1x32xbf16>, vector<32x32xbf16>, vector<1x32xf32> -> vector<1x32xf32>
    %c0_124 = arith.constant 0 : index
    %c0_125 = arith.constant 0 : index
    %315 = vector.load %arg13[%c0_124, %c0_125] : memref<1x32xf32, #tpu.memory_space<vmem>>, vector<1x32xf32>
    %316 = arith.addf %314, %315 : vector<1x32xf32>
    %317 = math.tanh %316 : vector<1x32xf32>
    %318 = arith.truncf %317 : vector<1x32xf32> to vector<1x32xbf16>
    %c0_126 = arith.constant 0 : index
    %c0_127 = arith.constant 0 : index
    %319 = vector.load %arg14[%c0_126, %c0_127] : memref<32x128xbf16, #tpu.memory_space<vmem>>, vector<32x128xbf16>
    %cst_128 = arith.constant dense<0.000000e+00> : vector<1x128xf32>
    %320 = tpu.matmul %318, %319, %cst_128 {dimension_numbers = #tpu.dot_dimension_numbers<[1], [0], [0], [1], [0, 0, 1, 1], [], []>} : vector<1x32xbf16>, vector<32x128xbf16>, vector<1x128xf32> -> vector<1x128xf32>
    %c0_129 = arith.constant 0 : index
    %c0_130 = arith.constant 0 : index
    %321 = vector.load %arg15[%c0_129, %c0_130] : memref<1x128xf32, #tpu.memory_space<vmem>>, vector<1x128xf32>
    %322 = arith.addf %320, %321 : vector<1x128xf32>
    %323 = vector.shape_cast %322 : vector<1x128xf32> to vector<1x128xf32>
    %324 = vector.broadcast %323 : vector<1x128xf32> to vector<8x128xf32>
    %c0_131 = arith.constant 0 : index
    %c0_132 = arith.constant 0 : index
    %325 = vector.load %arg23[%c0_131, %c0_132] : memref<8x128xf32, #tpu.memory_space<vmem>>, vector<8x128xf32>
    tpu.vector_store %arg23[%c0_131, %c0_132], %324 {strides = array<i32>} : memref<8x128xf32, #tpu.memory_space<vmem>>, vector<8x128xf32>,
    return
  }
  func.func @transform_0(%arg0: i32) -> (i32, i32) {
    %c0_i32 = arith.constant 0 : i32
    %c0_i32_0 = arith.constant 0 : i32
    return %arg0, %c0_i32 : i32, i32
  }
  func.func @transform_1(%arg0: i32) -> (i32, i32, i32) {
    %c0_i32 = arith.constant 0 : i32
    %c0_i32_0 = arith.constant 0 : i32
    %c0_i32_1 = arith.constant 0 : i32
    return %arg0, %c0_i32, %c0_i32_0 : i32, i32, i32
  }
  func.func @transform_2(%arg0: i32) -> (i32, i32) {
    %c0_i32 = arith.constant 0 : i32
    %c0_i32_0 = arith.constant 0 : i32
    %c0_i32_1 = arith.constant 0 : i32
    return %c0_i32, %c0_i32_0 : i32, i32
  }
  func.func @transform_3(%arg0: i32) -> (i32, i32) {
    %c0_i32 = arith.constant 0 : i32
    %c0_i32_0 = arith.constant 0 : i32
    %c0_i32_1 = arith.constant 0 : i32
    return %c0_i32, %c0_i32_0 : i32, i32
  }
  func.func @transform_4(%arg0: i32) -> (i32, i32, i32) {
    %c0_i32 = arith.constant 0 : i32
    %c0_i32_0 = arith.constant 0 : i32
    %c0_i32_1 = arith.constant 0 : i32
    %c0_i32_2 = arith.constant 0 : i32
    return %c0_i32, %c0_i32_0, %c0_i32_1 : i32, i32, i32
  }
  func.func @transform_5(%arg0: i32) -> (i32, i32, i32) {
    %c0_i32 = arith.constant 0 : i32
    %c0_i32_0 = arith.constant 0 : i32
    %c0_i32_1 = arith.constant 0 : i32
    %c0_i32_2 = arith.constant 0 : i32
    return %c0_i32, %c0_i32_0, %c0_i32_1 : i32, i32, i32
  }
  func.func @transform_6(%arg0: i32) -> (i32, i32, i32) {
    %c0_i32 = arith.constant 0 : i32
    %c0_i32_0 = arith.constant 0 : i32
    %c0_i32_1 = arith.constant 0 : i32
    %c0_i32_2 = arith.constant 0 : i32
    return %c0_i32, %c0_i32_0, %c0_i32_1 : i32, i32, i32
  }
  func.func @transform_7(%arg0: i32) -> (i32, i32, i32) {
    %c0_i32 = arith.constant 0 : i32
    %c0_i32_0 = arith.constant 0 : i32
    %c0_i32_1 = arith.constant 0 : i32
    %c0_i32_2 = arith.constant 0 : i32
    return %c0_i32, %c0_i32_0, %c0_i32_1 : i32, i32, i32
  }
  func.func @transform_8(%arg0: i32) -> (i32, i32, i32) {
    %c0_i32 = arith.constant 0 : i32
    %c0_i32_0 = arith.constant 0 : i32
    %c0_i32_1 = arith.constant 0 : i32
    %c0_i32_2 = arith.constant 0 : i32
    return %c0_i32, %c0_i32_0, %c0_i32_1 : i32, i32, i32
  }
  func.func @transform_9(%arg0: i32) -> (i32, i32, i32) {
    %c0_i32 = arith.constant 0 : i32
    %c0_i32_0 = arith.constant 0 : i32
    %c0_i32_1 = arith.constant 0 : i32
    %c0_i32_2 = arith.constant 0 : i32
    return %c0_i32, %c0_i32_0, %c0_i32_1 : i32, i32, i32
  }
  func.func @transform_10(%arg0: i32) -> (i32, i32, i32) {
    %c0_i32 = arith.constant 0 : i32
    %c0_i32_0 = arith.constant 0 : i32
    %c0_i32_1 = arith.constant 0 : i32
    %c0_i32_2 = arith.constant 0 : i32
    return %c0_i32, %c0_i32_0, %c0_i32_1 : i32, i32, i32
  }
  func.func @transform_11(%arg0: i32) -> (i32, i32) {
    %c0_i32 = arith.constant 0 : i32
    %c0_i32_0 = arith.constant 0 : i32
    %c0_i32_1 = arith.constant 0 : i32
    return %c0_i32, %c0_i32_0 : i32, i32
  }
  func.func @transform_12(%arg0: i32) -> (i32, i32) {
    %c0_i32 = arith.constant 0 : i32
    %c0_i32_0 = arith.constant 0 : i32
    %c0_i32_1 = arith.constant 0 : i32
    return %c0_i32, %c0_i32_0 : i32, i32
  }
  func.func @transform_13(%arg0: i32) -> (i32, i32) {
    %c0_i32 = arith.constant 0 : i32
    %c0_i32_0 = arith.constant 0 : i32
    %c0_i32_1 = arith.constant 0 : i32
    return %c0_i32, %c0_i32_0 : i32, i32
  }
  func.func @transform_14(%arg0: i32) -> (i32, i32) {
    %c0_i32 = arith.constant 0 : i32
    %c0_i32_0 = arith.constant 0 : i32
    %c0_i32_1 = arith.constant 0 : i32
    return %c0_i32, %c0_i32_0 : i32, i32
  }
  func.func @transform_15(%arg0: i32) -> (i32, i32) {
    %c0_i32 = arith.constant 0 : i32
    %c0_i32_0 = arith.constant 0 : i32
    %c0_i32_1 = arith.constant 0 : i32
    return %c0_i32, %c0_i32_0 : i32, i32
  }
  func.func @transform_16(%arg0: i32) -> (i32, i32) {
    %c0_i32 = arith.constant 0 : i32
    %c0_i32_0 = arith.constant 0 : i32
    %c0_i32_1 = arith.constant 0 : i32
    return %c0_i32, %c0_i32_0 : i32, i32
  }
  func.func @transform_17(%arg0: i32) -> (i32, i32) {
    %c0_i32 = arith.constant 0 : i32
    %c0_i32_0 = arith.constant 0 : i32
    %c0_i32_1 = arith.constant 0 : i32
    return %c0_i32, %c0_i32_0 : i32, i32
  }
  func.func @transform_18(%arg0: i32) -> (i32, i32) {
    %c0_i32 = arith.constant 0 : i32
    %c0_i32_0 = arith.constant 0 : i32
    %c0_i32_1 = arith.constant 0 : i32
    return %c0_i32, %c0_i32_0 : i32, i32
  }
  func.func @transform_19(%arg0: i32) -> (i32, i32) {
    %c0_i32 = arith.constant 0 : i32
    %c0_i32_0 = arith.constant 0 : i32
    %c0_i32_1 = arith.constant 0 : i32
    return %c0_i32, %c0_i32_0 : i32, i32
  }
  func.func @transform_20(%arg0: i32) -> (i32, i32) {
    %c0_i32 = arith.constant 0 : i32
    %c0_i32_0 = arith.constant 0 : i32
    %c0_i32_1 = arith.constant 0 : i32
    return %c0_i32, %c0_i32_0 : i32, i32
  }
  func.func @transform_21(%arg0: i32) -> (i32, i32) {
    %c0_i32 = arith.constant 0 : i32
    %c0_i32_0 = arith.constant 0 : i32
    return %arg0, %c0_i32 : i32, i32
  }
  func.func @transform_22(%arg0: i32) -> (i32, i32) {
    %c0_i32 = arith.constant 0 : i32
    %c0_i32_0 = arith.constant 0 : i32
    return %arg0, %c0_i32 : i32, i32
  }
}

</mosaic_0001>

<bundles_post_ra>
// kernel: tpu_custom_call.1
= control target key start
LH: loop header
LB: loop body
LE: loop exit
PB: predicated region body
PF: predicated region fallthrough
CT: control target
= control target key end

     0   :  { %s5105_s0 = inlined_call_operand.hbm [shape: f32[16,32], index: 0, kind: input, shape index: {}]   ;;  %s5106_s1 = inlined_call_operand.hbm [shape: f32[2,1,8], index: 1, kind: input, shape index: {}]   ;;  %s5107_s2 = inlined_call_operand.hbm [shape: f32[1,32], index: 2, kind: input, shape index: {}]   ;;  %s5108_s3 = inlined_call_operand.hbm [shape: f32[1,32], index: 3, kind: input, shape index: {}]   ;;  %s5109_s4 = inlined_call_operand.vmem [shape: bf16[2,32,96], index: 4, kind: input, shape index: {}]   ;;  %s5110_s5 = inlined_call_operand.hbm [shape: f32[2,1,96], index: 5, kind: input, shape index: {}]   ;;  %s5111_s6 = inlined_call_operand.vmem [shape: bf16[2,32,32], index: 6, kind: input, shape index: {}]   ;;  %s5112_s7 = inlined_call_operand.vmem [shape: bf16[2,32,64], index: 7, kind: input, shape index: {}]   ;;  %s5113_s8 = inlined_call_operand.hbm [shape: f32[2,1,64], index: 8, kind: input, shape index: {}]   ;;  %s5114_s9 = inlined_call_operand.vmem [shape: bf16[2,64,32], index: 9, kind: input, shape index: {}]   ;;  %s5115_s10 = inlined_call_operand.vmem [shape: f32[2,6,32], index: 10, kind: input, shape index: {}]   ;;  %s5116_s11 = inlined_call_operand.vmem [shape: bf16[32,32], index: 11, kind: input, shape index: {}]   ;;  %s5117_s12 = inlined_call_operand.vmem [shape: f32[1,32], index: 12, kind: input, shape index: {}]   ;;  %s5118_s13 = inlined_call_operand.hbm [shape: bf16[32,128], index: 13, kind: input, shape index: {}]   ;;  %s5119_s14 = inlined_call_operand.vmem [shape: f32[1,128], index: 14, kind: input, shape index: {}]   ;;  %s5120_s15 = inlined_call_operand.hbm [shape: bf16[32,32], index: 15, kind: input, shape index: {}]   ;;  %s5121_s16 = inlined_call_operand.vmem [shape: f32[1,32], index: 16, kind: input, shape index: {}]   ;;  %s5122_s17 = inlined_call_operand.vmem [shape: f32[1,32], index: 17, kind: input, shape index: {}]   ;;  %s5123_s18 = inlined_call_operand.vmem [shape: f32[1,32], index: 18, kind: input, shape index: {}]   ;;  %s5124_s19 = inlined_call_operand.hbm [shape: bf16[32,128], index: 19, kind: input, shape index: {}]   ;;  %s5125_s20 = inlined_call_operand.vmem [shape: f32[1,128], index: 20, kind: input, shape index: {}]   ;;  %s5126_s21 = inlined_call_operand.hbm [shape: f32[16,128], index: 21, kind: output, shape index: {0}]   ;;  %s5127_s22 = inlined_call_operand.hbm [shape: f32[16,128], index: 22, kind: output, shape index: {1}]  }
   0x1   :  { %5148 = sst [smem:[#allocation31_spill]] %s5105_s0 }
   0x2   :  { %5149 = sst [smem:[#allocation32_spill]] %s5106_s1 }
   0x3   :  { %5150 = sst [smem:[#allocation33_spill]] %s5107_s2 }
   0x4   :  { %5151 = sst [smem:[#allocation34_spill]] %s5108_s3 }
   0x5   :  { %5152 = sst [smem:[#allocation35_spill]] %s5109_s4 }
   0x6   :  { %5153 = sst [smem:[#allocation36_spill]] %s5110_s5 }
   0x7   :  { %5154 = sst [smem:[#allocation37_spill]] %s5111_s6 }
   0x8   :  { %5155 = sst [smem:[#allocation38_spill]] %s5112_s7 }
   0x9   :  { %5156 = sst [smem:[#allocation39_spill]] %s5113_s8 }
   0xa   :  { %5157 = sst [smem:[#allocation40_spill]] %s5118_s13 }
   0xb   :  { %5158 = sst [smem:[#allocation41_spill]] %s5119_s14 }
   0xc   :  { %5159 = sst [smem:[#allocation42_spill]] %s5120_s15 }
   0xd   :  { %5160 = sst [smem:[#allocation43_spill]] %s5124_s19 }
   0xe   :  { %5161 = sst [smem:[#allocation44_spill]] %s5125_s20 }
   0xf   :  { %5162 = sst [smem:[#allocation45_spill]] %s5126_s21 }
  0x10   :  { %5163 = sst [smem:[#allocation46_spill]] %s5127_s22 }
  0x11   :  { %28 = vsyncpa [#allocation3], 0 }
  0x12   :  { %30 = vsyncpa [#allocation3 + $0x1], 0 }
  0x13   :  { %31 = vsyncpa [#allocation6], 0 }
  0x14   :  { %33 = vsyncpa [#allocation6 + $0x1], 0 }
  0x15   :  { %34 = vsyncpa [#allocation9], 0 }
  0x16   :  { %35 = vsyncpa [#allocation12], 0 }
  0x17   :  { %36 = vsyncpa [#allocation15], 0 }
  0x18   :  { %37 = vsyncpa [#allocation4], 0 }
  0x19   :  { %39 = vsyncpa [#allocation4 + $0x1], 0 }
  0x1a   :  { %40 = vsyncpa [#allocation19], 0 }
  0x1b   :  { %42 = vsyncpa [#allocation19 + $0x1], 0  ;;  %s4413_s3 = smov 0   ;;  %s4415_s28 = smov 0  }
  0x1c   :  { %s4417_s29 = smov 0   ;;  %s4419_s30 = smov 0  }
  0x1d LB: > { %5164 = sst [smem:[#allocation28_spill]] %s4275_s29  ;;  %s4281_s4 = smov [#allocation7]   ;;  %s4279_s30 = sphi %s4419_s30, %s5208_s30   ;;  %s4275_s29 = sphi %s4417_s29, %s5210_s29   ;;  %s4271_s28 = sphi %s4415_s28, %s5212_s28   ;;  %s4267_s3 = sphi %s4413_s3, %s5211_s3  }
  0x1e   : > { %s569_s0 = sshll.u32 %s4281_s4, 4  ;;  %s4434_s23 = sadd.s32 4294967295, %s4279_s30   ;;  %s570_s0 = int_to_ptr.vmem [resolvable:$true] %s569_s0 }
  0x1f   : > { %p3325_p0 = scmp.ge.s32.totalorder %s4279_s30, 1  ;;  %p5134_p1 = scmp.eq.s32.totalorder %s4434_s23, 0 }
  0x20   : > { %p556_p2 = scmp.lt.s32.totalorder %s4279_s30, 3  ;;  %s4282_s5 = smov [#allocation8]  }
  0x21   : > { %s580_s24 = sshll.u32 %s4282_s5, 4  ;;  %s4283_s25 = smov [#allocation11]   ;;  %s581_s24 = int_to_ptr.vmem [resolvable:$true] %s580_s24 }
  0x22   : > { %p4439_p3 = pnand %p3325_p0, %p556_p2  ;;  %s612_s26 = sshll.u32 %s4283_s25, 4  ;;  %s4452_s26 = int_to_ptr.vmem [resolvable:$true] %s612_s26 }
  0x23   : > { %s3938_s27 = scalar_lea.vmem %s570_s0, 16  ;;  %s3945_s4 = scalar_lea.vmem %s570_s0, 32 }
  0x24   : > { %s5165_s1 = scalar_select %p4439_p3, 1, 0 }
  0x25   : > { %p3750_p5 = pneg %p4439_p3  ;;  %p3939_p8 = scmp.ne.s32.totalorder %s570_s0, %s3938_s27 }
  0x26   : > { %p3946_p11 = scmp.lt.s32.totalorder %s570_s0, %s570_s0  ;;  %p3947_p12 = scmp.lt.s32.totalorder %s3945_s4, %s3938_s27 }
  0x27   : > { %p4448_p6 = pnand %p3750_p5, %p5134_p1 }
  0x28   : > { %p3948_p13 = por %p3947_p12, %p3946_p11 }
  0x29   : > { %p4456_p7 = pneg %p4448_p6 }
  0x2b   : > { %p3941_p9 = pnand %p3939_p8, %p4456_p7 }
  0x2d   : > { %p3942_p10 = pneg %p3941_p9 }
  0x2f   : > { %p3949_p0 = pnand %p3948_p13, %p3942_p10 }
  0x31   : > { %3952 = shalt.err (!%p3949_p0)
}
  0x32   : > { %s5168_s22 = sld [smem:[#allocation33_spill]]  ;;  %s3964_s14 = scalar_lea.vmem %s581_s24, 16 }
  0x33   : > { %p3965_p2 = scmp.ne.s32.totalorder %s581_s24, %s3964_s14  ;;  %s3971_s21 = scalar_lea.vmem %s581_s24, 32 }
  0x34   : > { %p3972_p8 = scmp.lt.s32.totalorder %s581_s24, %s581_s24  ;;  %p3973_p9 = scmp.lt.s32.totalorder %s3971_s21, %s3964_s14 }
  0x35   : > { %p3967_p5 = pnand %p3965_p2, %p4456_p7 }
  0x36   : > { %p3974_p1 = por %p3973_p9, %p3972_p8 }
  0x37   : > { %p3968_p4 = pneg %p3967_p5 }
  0x38   : > { %3753 = dma.hbm_to_vmem [thread:$0]  (!%p4448_p6), %s5168_s22, 16, %s570_s0, [#allocation6]  }
  0x39   : > { %p3975_p3 = pnand %p3974_p1, %p3968_p4 }
  0x3b   : > { %3978 = shalt.err (!%p3975_p3)
}
  0x3c   : > { %s5169_s20 = sld [smem:[#allocation34_spill]]  ;;  %s3990_s22 = scalar_lea.vmem %s4452_s26, 32 }
  0x3d   : > { %p3991_p10 = scmp.ne.s32.totalorder %s4452_s26, %s3990_s22  ;;  %p3998_p13 = scmp.lt.s32.totalorder %s4452_s26, %s4452_s26 }
  0x3e   : > { %p3999_p0 = scmp.lt.s32.totalorder %s3990_s22, %s3990_s22 }
  0x3f   : > { %p3993_p11 = pnand %p3991_p10, %p4456_p7 }
  0x40   : > { %p4000_p1 = por %p3999_p0, %p3998_p13 }
  0x41   : > { %p3994_p12 = pneg %p3993_p11 }
  0x42   : > { %3756 = dma.hbm_to_vmem [thread:$0]  (!%p4448_p6), %s5169_s20, 16, %s581_s24, [#allocation9]  }
  0x43   : > { %p4001_p3 = pnand %p4000_p1, %p3994_p12 }
  0x45   : > { %4004 = shalt.err (!%p4001_p3)
}
  0x46   : > { %s4284_s14 = smov 16   ;;  %s4285_s21 = smov 1  }
  0x47   : > { %s5170_s8 = sld [smem:[#allocation39_spill]]  ;;  %s4286_s24 = smov [#allocation14]  }
  0x48   : > { %s653_s5 = sshll.u32 %s4286_s24, 4  ;;  %s4287_s25 = smov [#allocation10]   ;;  %s654_s5 = int_to_ptr.vmem [resolvable:$true] %s653_s5 }
  0x49   : > { %s593_s27 = sshll.u32 %s4287_s25, 4  ;;  %s4016_s4 = scalar_lea.vmem %s654_s5, 256  ;;  %s594_s27 = int_to_ptr.vmem [resolvable:$true] %s593_s27 }
  0x4a   : > { %p4017_p4 = scmp.ne.s32.totalorder %s654_s5, %s4016_s4  ;;  %p4024_p8 = scmp.lt.s32.totalorder %s654_s5, %s654_s5 }
  0x4b   : > { %p4025_p9 = scmp.lt.s32.totalorder %s4016_s4, %s4016_s4 }
  0x4c   : > { %p4019_p2 = pnand %p4017_p4, %p4456_p7 }
  0x4d   : > { %3762 = dma.hbm_to_vmem [thread:$0]  (!%p4448_p6), %s5170_s8, 32, %s4452_s26, [#allocation12], %s4284_s14, %s4284_s14, %s4285_s21  }
  0x4e   : > { %p4020_p5 = pneg %p4019_p2  ;;  %p4026_p10 = por %p4025_p9, %p4024_p8 }
  0x50   : > { %p4027_p11 = pnand %p4026_p10, %p4020_p5 }
  0x52   : > { %4030 = shalt.err (!%p4027_p11)
}
  0x53   : > { %s5136_s22 = smov 64   ;;  %s5138_s20 = smov 4  }
  0x54   : > { %s5171_s15 = sld [smem:[#allocation42_spill]]  ;;  %s4042_s24 = scalar_lea.vmem %s594_s27, 32 }
  0x55   : > { %p4043_p12 = scmp.ne.s32.totalorder %s594_s27, %s4042_s24  ;;  %p4050_p1 = scmp.lt.s32.totalorder %s594_s27, %s594_s27 }
  0x56   : > { %p4051_p3 = scmp.lt.s32.totalorder %s4042_s24, %s4042_s24 }
  0x57   : > { %p4045_p13 = pnand %p4043_p12, %p4456_p7 }
  0x58   : > { %p4052_p4 = por %p4051_p3, %p4050_p1 }
  0x59   : > { %p4046_p0 = pneg %p4045_p13 }
  0x5a   : > { %3768 = dma.hbm_to_vmem [thread:$0]  (!%p4448_p6), %s5171_s15, 256, %s654_s5, [#allocation15], %s5136_s22, %s5136_s22, %s5138_s20  }
  0x5b   : > { %p4053_p2 = pnand %p4052_p4, %p4046_p0 }
  0x5d   : > { %4056 = shalt.err (!%p4053_p2)
}
  0x5e   : > { %s5172_s26 = sld [smem:[#allocation36_spill]]  ;;  %s4290_s5 = smov [#allocation13]  }
  0x5f   : > { %s637_s0 = sshll.u32 %s4290_s5, 4  ;;  %s4291_s22 = smov [#allocation16]   ;;  %s638_s0 = int_to_ptr.vmem [resolvable:$true] %s637_s0 }
  0x60   : > { %s675_s20 = sshll.u32 %s4291_s22, 4  ;;  %s4068_s8 = scalar_lea.vmem %s638_s0, 256  ;;  %s676_s20 = int_to_ptr.vmem [resolvable:$true] %s675_s20 }
  0x61   : > { %p4069_p5 = scmp.ne.s32.totalorder %s638_s0, %s4068_s8  ;;  %p4076_p10 = scmp.lt.s32.totalorder %s638_s0, %s638_s0 }
  0x62   : > { %p4077_p11 = scmp.lt.s32.totalorder %s4068_s8, %s4068_s8 }
  0x63   : > { %p4071_p8 = pnand %p4069_p5, %p4456_p7 }
  0x64   : > { %3759 = dma.hbm_to_vmem [thread:$0]  (!%p4448_p6), %s5172_s26, 32, %s594_s27, [#allocation9], %s4284_s14, %s4284_s14, %s4285_s21  }
  0x65   : > { %p4072_p9 = pneg %p4071_p8  ;;  %p4078_p12 = por %p4077_p11, %p4076_p10 }
  0x67   : > { %p4079_p13 = pnand %p4078_p12, %p4072_p9 }
  0x69   : > { %4082 = shalt.err (!%p4079_p13)
}
  0x6a   : > { %s5173_s24 = smov 4   ;;  %s5174_s25 = smov 64  }
  0x6b   : > { %s5175_s13 = sld [smem:[#allocation40_spill]]  ;;  %s4094_s27 = scalar_lea.vmem %s676_s20, 256 }
  0x6c   : > { %p4095_p0 = scmp.ne.s32.totalorder %s676_s20, %s4094_s27  ;;  %p4102_p4 = scmp.lt.s32.totalorder %s676_s20, %s676_s20 }
  0x6d   : > { %p4103_p2 = scmp.lt.s32.totalorder %s4094_s27, %s4094_s27 }
  0x6e   : > { %p4097_p1 = pnand %p4095_p0, %p4456_p7 }
  0x6f   : > { %p4104_p5 = por %p4103_p2, %p4102_p4 }
  0x70   : > { %p4098_p3 = pneg %p4097_p1 }
  0x71   : > { %3765 = dma.hbm_to_vmem [thread:$0]  (!%p4448_p6), %s5175_s13, 256, %s638_s0, [#allocation12], %s5174_s25, %s5174_s25, %s5173_s24  }
  0x72   : > { %p4105_p8 = pnand %p4104_p5, %p4098_p3 }
  0x74   : > { %4108 = shalt.err (!%p4105_p8)
}
  0x75   : > { %s5176_s19 = sld [smem:[#allocation43_spill]]  ;;  %s3324_s6 = sadd.s32 4294967294, %s4279_s30  }
  0x76   : > { %s4531_s2 = sadd.s32 1, %s4279_s30   ;;  %s55_s4 = sadd.s32 1, %s4275_s29 }
  0x77   : > { %5177 = sst [smem:[#allocation29_spill]] %s4531_s2  ;;  %s52_s26 = ssub.s32 %s4279_s30, %s4531_s2 }
  0x78   : > { %p62_p7 = scmp.ne.s32.totalorder %s4275_s29, %s4271_s28  ;;  %p53_p9 = scmp.eq.s32.totalorder %s52_s26, 0 }
  0x79   : > { %p63_p10 = scmp.eq.s32.totalorder %s4279_s30, 0  ;;  %p68_p11 = scmp.ne.s32.totalorder %s4271_s28, %s4267_s3 }
  0x7a   : > { %p517_p12 = scmp.eq.s32.totalorder %s4434_s23, 1  ;;  %p5179_p0 = scmp.eq.s32.totalorder %s4434_s23, 0 }
  0x7b   : > { %3771 = dma.hbm_to_vmem [thread:$0]  (!%p4448_p6), %s5176_s19, 256, %s676_s20, [#allocation15], %s5174_s25, %s5174_s25, %s5173_s24  }
  0x7c   : > { %s4543_s5 = scalar_select %p53_p9, %s4275_s29, %s55_s4  }
  0x7d   : > { %p64_p13 = por %p63_p10, %p62_p7  ;;  %p4547_p1 = por %p5179_p0, %p68_p11 }
  0x7e   : > { %5178 = sst [smem:[#allocation30_spill]] %s4543_s5  ;;  %p4551_p6 = por %p517_p12, %p62_p7 }
  0x7f   : > { %s5180_s20 = scalar_select %p4547_p1, 1, 0 }
  0x80   : > { %s5181_s0 = scalar_select %p4551_p6, 1, 0 }
  0x81   : > { %p523_p3 = scmp.eq.s32.totalorder %s3324_s6, 1  ;;  %p3793_p4 = scmp.lt.s32.totalorder %s4279_s30, 2 }
  0x82   : > { %s4557_s24 = sand.u32 1, %s4275_s29   ;;  %s3335_s21 = sshll.u32 %s4279_s30, 7 }
  0x83   : > { %p4559_p2 = por %p523_p3, %p68_p11  ;;  %s3334_s14 = sshll.u32 %s4557_s24, 3 }
  0x84   : > { %s5183_s22 = sld [smem:[#allocation31_spill]]  ;;  %s696_s6 = scalar_lea.vmem [#allocation2], %s3334_s14 }
  0x85   : > { %s5182_s25 = scalar_select %p4559_p2, 1, 0 }
  0x86   : > { %s703_s26 = sshll.u32 %s696_s6, 4  ;;  %p4570_p5 = pnand %p3793_p4, %p64_p13  ;;  %s704_s26 = int_to_ptr.vmem [resolvable:$true] %s703_s26 }
  0x87   : > { %s693_s19 = scalar_lea.sflag [#allocation3], %s4557_s24 }
  0x88   : > { %p4111_p7 = pneg %p4570_p5 }
  0x8a   : > { %s4568_s4 = scalar_lea.hbm %s5183_s22, %s3335_s21  ;;  %s4114_s27 = scalar_lea.hbm %s5183_s22, 256 }
  0x8b   : > { %s4109_s5 = scalar_lea.hbm %s4568_s4, 128  ;;  %p4115_p11 = scmp.lt.s32.totalorder %s4568_s4, %s5183_s22 }
  0x8c   : > { %p4110_p8 = scmp.ne.s32.totalorder %s4568_s4, %s4109_s5  ;;  %p4116_p12 = scmp.lt.s32.totalorder %s4114_s27, %s4109_s5 }
  0x8e   : > { %p4112_p9 = pnand %p4111_p7, %p4110_p8  ;;  %p4117_p13 = por %p4116_p12, %p4115_p11 }
  0x90   : > { %p4113_p10 = pneg %p4112_p9 }
  0x92   : > { %p4118_p0 = pnand %p4117_p13, %p4113_p10 }
  0x94   : > { %4121 = shalt.err (!%p4118_p0)
}
  0x95   : > { %s4122_s15 = scalar_lea.vmem %s704_s26, 128  ;;  %s4292_s29 = smov [#allocation2]  }
  0x96   : > { %p4123_p3 = scmp.ne.s32.totalorder %s704_s26, %s4122_s15  ;;  %s4127_s2 = sshll.u32 %s4292_s29, 4  ;;  %s4128_s2 = int_to_ptr.vmem [resolvable:$false] %s4127_s2 }
  0x97   : > { %s4129_s21 = scalar_lea.vmem %s4128_s2, 256  ;;  %p4130_p9 = scmp.lt.s32.totalorder %s704_s26, %s4128_s2 }
  0x98   : > { %p4125_p4 = pnand %p4123_p3, %p4111_p7  ;;  %p4131_p2 = scmp.lt.s32.totalorder %s4129_s21, %s4122_s15 }
  0x9a   : > { %p4126_p8 = pneg %p4125_p4  ;;  %p4132_p6 = por %p4131_p2, %p4130_p9 }
  0x9c   : > { %p4133_p1 = pnand %p4132_p6, %p4126_p8 }
  0x9e   : > { %4136 = shalt.err (!%p4133_p1)
}
  0x9f   : > { %3775 = dma.hbm_to_vmem [thread:$0]  (!%p4570_p5), %s4568_s4, 128, %s704_s26, %s693_s19  }
  0xa0   : > { %s3336_s5 = sshll.u32 %s4279_s30, 4  ;;  %s5185_s8 = sld [smem:[#allocation32_spill]] }
  0xa1   : > { %s713_s15 = scalar_lea.vmem [#allocation5], %s4557_s24  ;;  %s5186_s6 = sand.u32 1, %s4279_s30  }
  0xa2   : > { %s720_s2 = sshll.u32 %s713_s15, 4  ;;  %s711_s21 = scalar_lea.sflag [#allocation6], %s5186_s6  ;;  %s721_s2 = int_to_ptr.vmem [resolvable:$true] %s720_s2 }
  0xa6   : > { %s4600_s29 = scalar_lea.hbm %s5185_s8, %s3336_s5  ;;  %s4142_s26 = scalar_lea.hbm %s5185_s8, 32 }
  0xa7   : > { %s4137_s22 = scalar_lea.hbm %s4600_s29, 16  ;;  %p4143_p10 = scmp.lt.s32.totalorder %s4600_s29, %s5185_s8 }
  0xa8   : > { %p4138_p1 = scmp.ne.s32.totalorder %s4600_s29, %s4137_s22  ;;  %p4144_p11 = scmp.lt.s32.totalorder %s4142_s26, %s4137_s22 }
  0xaa   : > { %p4140_p6 = pnand %p4138_p1, %p4111_p7  ;;  %p4145_p12 = por %p4144_p11, %p4143_p10 }
  0xac   : > { %p4141_p2 = pneg %p4140_p6 }
  0xae   : > { %p4146_p13 = pnand %p4145_p12, %p4141_p2 }
  0xb0   : > { %4149 = shalt.err (!%p4146_p13)
}
  0xb1   : > { %s4150_s24 = scalar_lea.vmem %s721_s2, 16  ;;  %s4293_s27 = smov [#allocation5]  }
  0xb2   : > { %p4151_p0 = scmp.ne.s32.totalorder %s721_s2, %s4150_s24  ;;  %s4155_s15 = sshll.u32 %s4293_s27, 4  ;;  %s4156_s15 = int_to_ptr.vmem [resolvable:$false] %s4155_s15 }
  0xb3   : > { %s4157_s6 = scalar_lea.vmem %s4156_s15, 32  ;;  %p4158_p8 = scmp.lt.s32.totalorder %s721_s2, %s4156_s15 }
  0xb4   : > { %p4153_p3 = pnand %p4151_p0, %p4111_p7  ;;  %p4159_p9 = scmp.lt.s32.totalorder %s4157_s6, %s4150_s24 }
  0xb6   : > { %p4154_p4 = pneg %p4153_p3  ;;  %p4160_p1 = por %p4159_p9, %p4158_p8 }
  0xb8   : > { %p4161_p6 = pnand %p4160_p1, %p4154_p4 }
  0xba   : > { %4164 = shalt.err (!%p4161_p6)
}
  0xbb   : > { %3778 = dma.hbm_to_vmem [thread:$0]  (!%p4570_p5), %s4600_s29, 16, %s721_s2, %s711_s21  }
  0xbc   : > { %p5187_p2 = scmp.ne.s32.totalorder %s5165_s1, 0 }
  0xbd   : > { %s4626_s22 = sand.u32 (!%p5187_p2), 1, %s4271_s28   ;;  %p5188_p7 = scmp.ne.s32.totalorder (!%p5187_p2), %s5180_s20, 0 }
  0xbe   : > { %729 = sbr.rel (%p5187_p2) target bundleno = 6320 (0x18b0), region = 104  ;;  %s4629_s19 = sshll.u32 (!%p5187_p2), %s4626_s22, 3 }
  0xbf   : > { %s732_s4 = scalar_lea.sflag (!%p5187_p2), [#allocation3], %s4626_s22  ;;  %s735_s26 = scalar_lea.vmem (!%p5187_p2), [#allocation2], %s4629_s19 }
  0xc3   : > { %4234 = dma.done.wait (%p5188_p7), %s732_s4, 128  }
  0xc4   : > { %4236 = vsyncadd (%p5188_p7), %s732_s4, 4294967168  ;;  %s740_s13 = sand.u32 1, %s4434_s23   ;;  %s743_s29 = scalar_lea.vmem [#allocation5], %s4626_s22 }
  0xc5   : > { %s741_s1 = scalar_lea.sflag [#allocation6], %s740_s13 }
  0xc6   : > { %4238 = dma.done.wait (%p5188_p7), %s741_s1, 16  }
  0xc7   : > { %4240 = vsyncadd (%p5188_p7), %s741_s1, 4294967280  ;;  %p5189_p5 = scmp.eq.s32.totalorder %s4434_s23, 0 }
  0xc9   : > { %4242 = dma.done.wait (%p5189_p5), [#allocation6], 16   ;;  %p5190_p10 = pmov %p5189_p5 }
  0xca   : > { %p5191_p11 = pmov %p5189_p5 }
  0xcb   : > { %4244 = vsyncadd (%p5190_p10), [#allocation6], 4294967280 }
  0xcc   : > { %4246 = dma.done.wait (%p5191_p11), [#allocation9], 48   ;;  %p5192_p12 = pmov %p5189_p5 }
  0xcd   : > { %p5193_p13 = pmov %p5189_p5 }
  0xce   : > { %4248 = vsyncadd (%p5192_p12), [#allocation9], 4294967248 }
  0xcf   : > { %4250 = dma.done.wait (%p5193_p13), [#allocation12], 288   ;;  %p5194_p0 = pmov %p5189_p5 }
  0xd1   : > { %4252 = vsyncadd (%p5194_p0), [#allocation12], 4294967008  ;;  %p5195_p3 = pmov %p5194_p0 }
  0xd2   : > { %p5196_p4 = pmov %p5194_p0 }
  0xd3   : > { %4254 = dma.done.wait (%p5195_p3), [#allocation15], 512  }
  0xd4   : > { %4256 = vsyncadd (%p5196_p4), [#allocation15], 4294966784  ;;  %vm846_vm0 = vcmask 261120   ;;  %v843_v0 = vld [vmem:[%s735_s26] sm:$0xff]  ;;  %s5197_s21 = sld [smem:[#allocation35_spill]]  ;;  %v4294_v8 = vmov 0.0  }
  0xd5   : > { %v847_v1 = vsel %vm846_vm0, %v843_v0, 0.0  ;;  %3514 = vmatprep.subr.bf16.mxu0 %v4294_v8  ;;  %vm4295_vm1 = vmmov 0   ;;  %3522 = vmatprep.subr.bf16.mxu1 %v4294_v8  ;;  %v3348_v14 = vld [vmem:[#allocation7] ss:$0 sm:$0xff]  ;;  %v3349_v16 = vld [vmem:[#allocation8] ss:$0 sm:$0xff] }
  0xd6   : > { %848 = vadd.xlane.f32.xlu0 %v847_v1  ;;  %3518 = vmatprep.mubr.msk.bf16.mxu0 %vm4295_vm1, %v4294_v8  ;;  %v3350_v20 = vld [vmem:[#allocation10] ss:$0 sm:$0xff]  ;;  %vm1115_vm2 = vcmask 1043456   ;;  %vm1111_vm3 = vcmask 64512   ;;  %v4712_v55 = vld [vmem:[%s743_s29] ss:$0 sm:$0xff] }
  0xd7   : > { %3524 = vmatprep.mubr.msk.bf16.mxu1 %vm4295_vm1, %v4294_v8  ;;  %s5198_s15 = sld [smem:[#allocation37_spill]]  ;;  %vm1776_vm4 = vcmask 523264   ;;  %s5146_s29 = sshll.u32 %s4434_s23, 7 }
  0xd8   : > { %s5199_s7 = sld [smem:[#allocation38_spill]]  ;;  %s833_s20 = scalar_lea.vmem [#allocation17], %s4629_s19 }
  0xd9   : > { %s5200_s1 = sld [smem:[#allocation44_spill]]  ;;  %s3123_s2 = sshll.u32 %s833_s20, 4  ;;  %s5029_s2 = int_to_ptr.vmem [resolvable:$true] %s3123_s2 }
  0xda   : > { %v3847_v7 = vld [vmem:[%s5197_s21 + $0x8] sm:$0xff]   ;;  %v3848_v9 = vld [vmem:[%s5197_s21] sm:$0xff]   ;;  %s5201_s24 = sld [smem:[#allocation45_spill]]  ;;  %s3105_s6 = scalar_lea.sflag [#allocation4], %s4626_s22 }
  0xdb   : > { %3515 = vmatpush3.bf16.msra.mxu0 %v3847_v7  ;;  %s4165_s4 = scalar_lea.vmem %s5029_s2, 128  ;;  %p5202_p9 = scmp.ne.s32.totalorder %s5181_s0, 0 }
  0xdc   : > { %3516 = vmatprep.subr.bf16.mxu0 %v4294_v8  ;;  %p4166_p8 = scmp.ne.s32.totalorder %s5029_s2, %s4165_s4  ;;  %s4296_s26 = smov [#allocation17]  }
  0xdd   : > { %s4169_s13 = sshll.u32 %s4296_s26, 4  ;;  %s4170_s13 = int_to_ptr.vmem [resolvable:$false] %s4169_s13 }
  0xde   : > { %p4167_p1 = pnand %p4166_p8, %p5202_p9  ;;  %p4172_p2 = scmp.lt.s32.totalorder %s5029_s2, %s4170_s13 }
  0xdf   : > { %3517 = vmatpush3.bf16.msra.mxu0 %v3848_v9 }
  0xe0   : > { %3534 = vmatprep.subr.bf16.mxu0 %v4294_v8  ;;  %s5027_s27 = scalar_lea.hbm %s5201_s24, %s5146_s29  ;;  %p4168_p6 = pneg %p4167_p1 }
 0x15f   : > { %v849_v2 = vpop.xlane.xlu0 %848 }
 0x160   : > { %v851_v3 = vmul.f32 0.03125, %v849_v2 }
 0x162   : > { %v852_v4 = vsub.f32 %v843_v0, %v851_v3 }
 0x164   : > { %v853_v5 = vmul.f32 %v852_v4, %v852_v4 }
 0x166   : > { %v854_v6 = vsel %vm846_vm0, %v853_v5, 0.0 }
 0x167   : > { %855 = vadd.xlane.f32.xlu0 %v854_v6 }
 0x1f0   : > { %v856_v10 = vpop.xlane.xlu0 %855 }
 0x1f1   : > { %v857_v11 = vmul.f32 0.03125, %v856_v10 }
 0x1f3   : > { %v858_v12 = vadd.f32 1e-12, %v857_v11 }
 0x1f5   : > { %3875 = vrsqrt.f32 %v858_v12 }
 0x202   : > { %v3876_v13 = vpop.eup %3875 }
 0x203   : > { %v860_v15 = vmul.f32 %v3876_v13, %v852_v4 }
 0x205   : > { %v867_v17 = vmul.f32 %v3348_v14, %v860_v15 }
 0x207   : > { %v4675_v18 = vadd.f32 %v3349_v16, %v867_v17 }
 0x209   : > { %v876_v19 = vpack.c.bf16 %v4675_v18, %v4675_v18 }
 0x20b   : > { %3519 = vmatmul.mubr.msk.bf16.vlgmr.msra.gmra.mxu0 %vm846_vm0, %v876_v19 }
 0x20c   : > { %3536 = vmatprep.mubr.msk.bf16.mxu0 %vm4295_vm1, %v4294_v8 }
 0x2cb   : > { %v937_v21 = vpop.f32.mrf.mxu0 }
 0x2cc   : > { %v938_v22 = vadd.f32 %v3350_v20, %v937_v21 }
 0x2cd   : > { %v3520_v23 = vpop.f32.mrf.mxu0 }
 0x2ce   : > { %943 = vxpose.xlu1.b32.start.end [1/1] (short) (narrow) %v938_v22, 96 }
 0x2cf   : > { %v940_v24 = vpop.f32.mrf.mxu0 }
 0x2d1   : > { %v3521_v25 = vpop.f32.mrf.mxu0 }
 0x34a   : > { %v959_v26 = vpop.trf.xlu1 }
 0x34b   : > { %975 = vxpose.xlu1.b32.start.end [1/1] (short) (narrow) %v959_v26, 8 }
 0x34e   : > { %v960_v27 = vpop.trf.xlu1 }
 0x34f   : > { %1007 = vxpose.xlu0.b32.start.end [1/1] (short) (narrow) %v960_v27, 8 }
 0x352   : > { %v961_v28 = vpop.trf.xlu1 }
 0x353   : > { %1039 = vxpose.xlu1.b32.start.end [1/1] (short) (narrow) %v961_v28, 8 }
 0x356   : > { %v962_v29 = vpop.trf.xlu1 }
 0x357   : > { %1071 = vxpose.xlu0.b32.start.end [1/1] (short) (narrow) %v962_v29, 8 }
 0x35a   : > { %v963_v30 = vpop.trf.xlu1 }
 0x35b   : > { %v1107_v31 = vpack.c.bf16 %v963_v30, %v963_v30 }
 0x35d   : > { %v1117_v32 = vsel %vm1115_vm2, %v1107_v31, 0 }
 0x35e   : > { %3523 = vmatpush3.bf16.msra.mxu1 %v1117_v32  ;;  %v964_v33 = vpop.trf.xlu1 }
 0x35f   : > { %3528 = vmatprep.subr.bf16.mxu1 %v4294_v8  ;;  %v1108_v42 = vpack.c.bf16 %v964_v33, %v964_v33 }
 0x361   : > { %v1163_v45 = vsel %vm1115_vm2, %v1108_v42, 0 }
 0x362   : > { %v965_v34 = vpop.trf.xlu1 }
 0x363   : > { %v1109_v35 = vpack.c.bf16 %v965_v34, %v965_v34 }
 0x365   : > { %v1209_v36 = vsel %vm1115_vm2, %v1109_v35, 0 }
 0x366   : > { %3535 = vmatpush3.bf16.msra.mxu0 %v1209_v36  ;;  %v966_v37 = vpop.trf.xlu1 }
 0x367   : > { %3546 = vmatprep.subr.bf16.mxu0 %v4294_v8  ;;  %v1110_v47 = vpack.c.bf16 %v966_v37, %v966_v37 }
 0x369   : > { %v1255_v51 = vsel %vm1115_vm2, %v1110_v47, 0 }
 0x36a   : > { %v4686_v38 = vpop.trf.xlu1 }
 0x36e   : > { %v4688_v39 = vpop.trf.xlu1 }
 0x372   : > { %v4690_v40 = vpop.trf.xlu1 }
 0x376   : > { %v4692_v41 = vpop.trf.xlu1 }
 0x3c7   : > { %v991_v43 = vpop.trf.xlu1 }
 0x3c8   : > { %v1103_v44 = vpack.c.bf16 %v991_v43, %v991_v43 }
 0x3ca   : > { %3525 = vmatmul.mubr.msk.bf16.vlgmr.msra.gmra.mxu1 %vm1111_vm3, %v1103_v44 }
 0x3cb   : > { %3529 = vmatpush3.bf16.msra.mxu1 %v1163_v45  ;;  %v1023_v46 = vpop.trf.xlu0  ;;  %3530 = vmatprep.mubr.msk.bf16.mxu1 %vm4295_vm1, %v4294_v8 }
 0x3cc   : > { %3540 = vmatprep.subr.bf16.mxu1 %v4294_v8  ;;  %v1104_v48 = vpack.c.bf16 %v1023_v46, %v1023_v46 }
 0x3cf   : > { %v1055_v49 = vpop.trf.xlu1 }
 0x3d0   : > { %v1105_v50 = vpack.c.bf16 %v1055_v49, %v1055_v49 }
 0x3d2   : > { %3531 = vmatmul.mubr.msk.bf16.vlgmr.msra.gmra.mxu1 %vm1111_vm3, %v1104_v48  ;;  %3537 = vmatmul.mubr.msk.bf16.vlgmr.msra.gmra.mxu0 %vm1111_vm3, %v1105_v50 }
 0x3d3   : > { %3541 = vmatpush3.bf16.msra.mxu1 %v1255_v51  ;;  %v1087_v52 = vpop.trf.xlu0  ;;  %3542 = vmatprep.mubr.msk.bf16.mxu1 %vm4295_vm1, %v4294_v8 }
 0x3d4   : > { %3548 = vmatprep.mubr.msk.bf16.mxu0 %vm4295_vm1, %v4294_v8  ;;  %3552 = vmatprep.subr.bf16.mxu1 %v4294_v8  ;;  %v1106_v53 = vpack.c.bf16 %v1087_v52, %v1087_v52 }
 0x3da   : > { %3543 = vmatmul.mubr.msk.bf16.vlgmr.msra.gmra.mxu1 %vm1111_vm3, %v1106_v53 }
 0x3db   : > { %3554 = vmatprep.mubr.msk.bf16.mxu1 %vm4295_vm1, %v4294_v8 }
 0x48a   : > { %v1153_v54 = vpop.f32.mrf.mxu1 }
 0x48b   : > { %v1297_v56 = vmul.f32 0.35355338, %v1153_v54 }
 0x48c   : > { %v3526_v57 = vpop.f32.mrf.mxu1 }
 0x48d   : > { %v1307_v58 = vadd.f32 %v4712_v55, %v1297_v56 }
 0x48e   : > { %v1156_v59 = vpop.f32.mrf.mxu1 }
 0x48f   : > { %v1311_v60 = vsel %vm1111_vm3, %v1307_v58, -inf }
 0x490   : > { %v3527_v61 = vpop.f32.mrf.mxu1  ;;  %1312 = vmax.xlane.f32.xlu1 %v1311_v60 }
 0x492   : > { %v1199_v62 = vpop.f32.mrf.mxu1  ;;  %v1245_v63 = vpop.f32.mrf.mxu0 }
 0x493   : > { %v1298_v0 = vmul.f32 0.35355338, %v1199_v62  ;;  %v1299_v1 = vmul.f32 0.35355338, %v1245_v63 }
 0x494   : > { %v3532_v2 = vpop.f32.mrf.mxu1  ;;  %v3538_v3 = vpop.f32.mrf.mxu0 }
 0x495   : > { %v1308_v4 = vadd.f32 %v4712_v55, %v1298_v0  ;;  %v1309_v5 = vadd.f32 %v4712_v55, %v1299_v1  ;;  %v1357_v2 = vpack.c.bf16 %v4690_v40, %v4690_v40  ;;  %v3849_v40 = vld [vmem:[%s5198_s15 + $0x8] sm:$0xff]  }
 0x496   : > { %v1202_v6 = vpop.f32.mrf.mxu1  ;;  %v1248_v7 = vpop.f32.mrf.mxu0 }
 0x497   : > { %v1314_v9 = vsel %vm1111_vm3, %v1308_v4, -inf  ;;  %v1317_v10 = vsel %vm1111_vm3, %v1309_v5, -inf }
 0x498   : > { %v3533_v11 = vpop.f32.mrf.mxu1  ;;  %v3539_v12 = vpop.f32.mrf.mxu0  ;;  %1315 = vmax.xlane.f32.xlu0 %v1314_v9  ;;  %1318 = vmax.xlane.f32.xlu1 %v1317_v10 }
 0x49a   : > { %v1291_v13 = vpop.f32.mrf.mxu1 }
 0x49b   : > { %v1300_v14 = vmul.f32 0.35355338, %v1291_v13 }
 0x49c   : > { %v3544_v15 = vpop.f32.mrf.mxu1 }
 0x49d   : > { %v1310_v16 = vadd.f32 %v4712_v55, %v1300_v14 }
 0x49e   : > { %v1294_v17 = vpop.f32.mrf.mxu1 }
 0x49f   : > { %v1320_v19 = vsel %vm1111_vm3, %v1310_v16, -inf }
 0x4a0   : > { %v3545_v20 = vpop.f32.mrf.mxu1  ;;  %1321 = vmax.xlane.f32.xlu1 %v1320_v19 }
 0x519   : > { %v1313_v21 = vpop.xlane.xlu1 %1312 }
 0x51a   : > { %v1323_v22 = vsub.f32 %v1307_v58, %v1313_v21  ;;  %v1355_v58 = vpack.c.bf16 %v4686_v38, %v4686_v38  ;;  %v1356_v38 = vpack.c.bf16 %v4688_v39, %v4688_v39  ;;  %v1358_v39 = vpack.c.bf16 %v4692_v41, %v4692_v41 }
 0x51c   : > { %v1327_v23 = vmul.f32 1.442695, %v1323_v22 }
 0x51e   : > { %3877 = vpow2.f32 %v1327_v23 }
 0x521   : > { %v1316_v24 = vpop.xlane.xlu0 %1315  ;;  %v1319_v25 = vpop.xlane.xlu1 %1318 }
 0x522   : > { %v1324_v26 = vsub.f32 %v1308_v4, %v1316_v24  ;;  %v1325_v27 = vsub.f32 %v1309_v5, %v1319_v25  ;;  %v3850_v4 = vld [vmem:[%s5198_s15] sm:$0xff]   ;;  %v1584_v24 = vlaneseq }
 0x524   : > { %v1329_v28 = vmul.f32 1.442695, %v1324_v26  ;;  %v1331_v29 = vmul.f32 1.442695, %v1325_v27  ;;  %v4765_v25 = vshrl.u32 %v1584_v24, 7  ;;  %v3858_v24 = vld [vmem:[%s5197_s21 + $0x10] sm:$0xff]  }
 0x525   : > { %v4773_v27 = vld [vmem:[%s5115_s10] sm:$0x3f] }
 0x526   : > { %3879 = vpow2.f32 %v1329_v28  ;;  %v4768_v26 = vsub.s32 0, %v4765_v25 }
 0x527   : > { %3881 = vpow2.f32 %v1331_v29 }
 0x528   : > { %v1587_v28 = vrot.slane %v4773_v27, %v4768_v26 }
 0x529   : > { %v1322_v30 = vpop.xlane.xlu1 %1321 }
 0x52a   : > { %v1326_v31 = vsub.f32 %v1310_v16, %v1322_v30 }
 0x52b   : > { %v3878_v32 = vpop.eup %3877 }
 0x52c   : > { %v1333_v33 = vmul.f32 1.442695, %v1326_v31  ;;  %v1335_v34 = vsel %vm1111_vm3, %v3878_v32, 0.0 }
 0x52d   : > { %1336 = vadd.xlane.f32.xlu1 %v1335_v34 }
 0x52e   : > { %3883 = vpow2.f32 %v1333_v33 }
 0x533   : > { %v3880_v35 = vpop.eup %3879 }
 0x534   : > { %v3882_v36 = vpop.eup %3881  ;;  %v1338_v37 = vsel %vm1111_vm3, %v3880_v35, 0.0 }
 0x535   : > { %1339 = vadd.xlane.f32.xlu0 %v1338_v37  ;;  %v1341_v42 = vsel %vm1111_vm3, %v3882_v36, 0.0 }
 0x536   : > { %1342 = vadd.xlane.f32.xlu1 %v1341_v42 }
 0x53b   : > { %v3884_v43 = vpop.eup %3883 }
 0x53c   : > { %v1344_v44 = vsel %vm1111_vm3, %v3884_v43, 0.0 }
 0x53d   : > { %1345 = vadd.xlane.f32.xlu0 %v1344_v44 }
 0x5b6   : > { %v1337_v45 = vpop.xlane.xlu1 %1336 }
 0x5b7   : > { %3885 = vrcp.f32 %v1337_v45  ;;  %v3851_v45 = vld [vmem:[%s5199_s7 + $0x8] sm:$0xff]  }
 0x5be   : > { %v1340_v46 = vpop.xlane.xlu0 %1339 }
 0x5bf   : > { %3887 = vrcp.f32 %v1340_v46  ;;  %v1343_v47 = vpop.xlane.xlu1 %1342 }
 0x5c0   : > { %3889 = vrcp.f32 %v1343_v47 }
 0x5c4   : > { %v3886_v48 = vpop.eup %3885 }
 0x5c5   : > { %v1351_v49 = vmul.f32 %v3886_v48, %v3878_v32 }
 0x5c6   : > { %v1346_v50 = vpop.xlane.xlu0 %1345 }
 0x5c7   : > { %3891 = vrcp.f32 %v1346_v50  ;;  %v1359_v51 = vpack.c.bf16 %v1351_v49, %v1351_v49  ;;  %v1659_v49 = vsub.s32 1, %v4765_v25  ;;  %v1664_v50 = vsub.s32 2, %v4765_v25 }
 0x5c9   : > { %v1367_v52 = vsel %vm1111_vm3, %v1359_v51, 0  ;;  %v1660_v51 = vrot.slane %v4773_v27, %v1659_v49 }
 0x5ca   : > { %3547 = vmatpush3.bf16.xpose.msra.mxu0 %v1367_v52 }
 0x5cb   : > { %3558 = vmatprep.subr.bf16.mxu0 %v4294_v8 }
 0x5cc   : > { %v3888_v53 = vpop.eup %3887 }
 0x5cd   : > { %v3890_v54 = vpop.eup %3889  ;;  %v1352_v56 = vmul.f32 %v3888_v53, %v3880_v35 }
 0x5ce   : > { %v1353_v57 = vmul.f32 %v3890_v54, %v3882_v36  ;;  %v1665_v54 = vrot.slane %v4773_v27, %v1664_v50 }
 0x5cf   : > { %v1360_v59 = vpack.c.bf16 %v1352_v56, %v1352_v56 }
 0x5d0   : > { %v1361_v60 = vpack.c.bf16 %v1353_v57, %v1353_v57 }
 0x5d1   : > { %3549 = vmatmul.mubr.msk.bf16.vlgmr.msra.gmra.mxu0 %vm1111_vm3, %v1355_v58  ;;  %v1413_v61 = vsel %vm1111_vm3, %v1360_v59, 0  ;;  %v3853_v59 = vld [vmem:[%s5114_s9 + $0x18] sm:$0xff]  }
 0x5d2   : > { %3553 = vmatpush3.bf16.xpose.msra.mxu1 %v1413_v61  ;;  %v1459_v62 = vsel %vm1111_vm3, %v1361_v60, 0  ;;  %3560 = vmatprep.mubr.msk.bf16.mxu0 %vm4295_vm1, %v4294_v8  ;;  %v3854_v60 = vld [vmem:[%s5114_s9 + $0x10] sm:$0xff]   ;;  %v3855_v61 = vld [vmem:[%s5114_s9 + $0x8] sm:$0xff]  }
 0x5d3   : > { %3559 = vmatpush3.bf16.xpose.msra.mxu0 %v1459_v62  ;;  %3564 = vmatprep.subr.bf16.mxu1 %v4294_v8  ;;  %v3856_v62 = vld [vmem:[%s5114_s9] sm:$0xff]  }
 0x5d4   : > { %v3892_v63 = vpop.eup %3891  ;;  %3570 = vmatprep.subr.bf16.mxu0 %v4294_v8 }
 0x5d5   : > { %v1354_v0 = vmul.f32 %v3892_v63, %v3884_v43  ;;  %v3366_v63 = vld [vmem:[#allocation11] ss:$0 sm:$0xff] }
 0x5d7   : > { %v1362_v1 = vpack.c.bf16 %v1354_v0, %v1354_v0 }
 0x5d9   : > { %3555 = vmatmul.mubr.msk.bf16.vlgmr.msra.gmra.mxu1 %vm1111_vm3, %v1356_v38  ;;  %v1505_v3 = vsel %vm1111_vm3, %v1362_v1, 0 }
 0x5da   : > { %3561 = vmatmul.mubr.msk.bf16.vlgmr.msra.gmra.mxu0 %vm1111_vm3, %v1357_v2  ;;  %3565 = vmatpush3.bf16.xpose.msra.mxu1 %v1505_v3 }
 0x5db   : > { %3566 = vmatprep.mubr.msk.bf16.mxu1 %vm4295_vm1, %v4294_v8  ;;  %3574 = vmatprep.mubr.msk.bf16.mxu0 %vm4295_vm1, %v4294_v8 }
 0x5dc   : > { %3578 = vmatprep.subr.bf16.mxu1 %v4294_v8  ;;  %3571 = vmatpush3.bf16.msra.mxu0 %v3849_v40 }
 0x5dd   : > { %3572 = vmatprep.subr.bf16.mxu0 %v4294_v8 }
 0x5e0   : > { %3573 = vmatpush3.bf16.msra.mxu0 %v3850_v4 }
 0x5e1   : > { %3567 = vmatmul.mubr.msk.bf16.vlgmr.msra.gmra.mxu1 %vm1111_vm3, %v1358_v39  ;;  %3586 = vmatprep.subr.bf16.mxu0 %v4294_v8 }
 0x5e2   : > { %3582 = vmatprep.mubr.msk.bf16.mxu1 %vm4295_vm1, %v4294_v8  ;;  %3579 = vmatpush3.bf16.msra.mxu1 %v3851_v45 }
 0x5e3   : > { %3580 = vmatprep.subr.bf16.mxu1 %v4294_v8 }
 0x691   : > { %v1403_v41 = vpop.f32.mrf.mxu0 }
 0x692   : > { %1547 = vxpose.xlu1.b32.start [1/4] (short) (narrow) %v1403_v41, 8 }
 0x693   : > { %v3550_v5 = vpop.f32.mrf.mxu0 }
 0x695   : > { %v1406_v6 = vpop.f32.mrf.mxu0 }
 0x697   : > { %v3551_v7 = vpop.f32.mrf.mxu0 }
 0x698   : > { %v1750_v7 = vsub.s32 3, %v4765_v25 }
 0x699   : > { %v1449_v9 = vpop.f32.mrf.mxu1 }
 0x69a   : > { %v1495_v10 = vpop.f32.mrf.mxu0  ;;  %1548 = vxpose.xlu1.b32.cont [2/4] (short) (narrow) %v1449_v9, 8  ;;  %v1751_v9 = vrot.slane %v4773_v27, %v1750_v7 }
 0x69b   : > { %v3556_v11 = vpop.f32.mrf.mxu1 }
 0x69c   : > { %v3562_v12 = vpop.f32.mrf.mxu0 }
 0x69d   : > { %v1452_v13 = vpop.f32.mrf.mxu1 }
 0x69e   : > { %v1498_v14 = vpop.f32.mrf.mxu0  ;;  %1549 = vxpose.xlu1.b32.cont [3/4] (short) (narrow) %v1495_v10, 8 }
 0x69f   : > { %v3557_v15 = vpop.f32.mrf.mxu1 }
 0x6a0   : > { %v3563_v16 = vpop.f32.mrf.mxu0 }
 0x6a1   : > { %v1541_v17 = vpop.f32.mrf.mxu1 }
 0x6a2   : > { %1550 = vxpose.xlu1.b32.end [4/4] (short) (narrow) %v1541_v17, 8 }
 0x6a3   : > { %v3568_v19 = vpop.f32.mrf.mxu1 }
 0x6a5   : > { %v1544_v20 = vpop.f32.mrf.mxu1 }
 0x6a7   : > { %v3569_v21 = vpop.f32.mrf.mxu1 }
 0x712   : > { %v1563_v22 = vpop.trf.xlu1 }
 0x713   : > { %v1579_v23 = vpack.c.bf16 %v1563_v22, %v1563_v22 }
 0x715   : > { %3575 = vmatmul.mubr.msk.bf16.vlgmr.msra.gmra.mxu0 %vm846_vm0, %v1579_v23  ;;  %v3857_v23 = vld [vmem:[%s5197_s21 + $0x18] sm:$0xff]  }
 0x716   : > { %3594 = vmatprep.mubr.msk.bf16.mxu0 %vm4295_vm1, %v4294_v8  ;;  %3587 = vmatpush3.bf16.msra.mxu0 %v3853_v59 }
 0x717   : > { %3588 = vmatprep.subr.bf16.mxu0 %v4294_v8 }
 0x71a   : > { %3589 = vmatpush3.bf16.msra.mxu0 %v3854_v60 }
 0x71b   : > { %3590 = vmatprep.subr.bf16.mxu0 %v4294_v8 }
 0x71e   : > { %3591 = vmatpush3.bf16.msra.mxu0 %v3855_v61 }
 0x71f   : > { %3592 = vmatprep.subr.bf16.mxu0 %v4294_v8 }
 0x722   : > { %3593 = vmatpush3.bf16.msra.mxu0 %v3856_v62 }
 0x723   : > { %3612 = vmatprep.subr.bf16.mxu0 %v4294_v8 }
 0x7d5   : > { %v1637_v29 = vpop.f32.mrf.mxu0 }
 0x7d6   : > { %v1638_v30 = vadd.f32 %v1637_v29, %v1587_v28 }
 0x7d7   : > { %v3576_v31 = vpop.f32.mrf.mxu0 }
 0x7d8   : > { %v1643_v32 = vadd.f32 %v1638_v30, %v4675_v18  ;;  %v3852_v18 = vld [vmem:[%s5199_s7] sm:$0xff]   ;;  %v1836_v31 = vsub.s32 4, %v4765_v25 }
 0x7d9   : > { %v1640_v33 = vpop.f32.mrf.mxu0  ;;  %3581 = vmatpush3.bf16.msra.mxu1 %v3852_v18 }
 0x7da   : > { %v1644_v34 = vsel %vm846_vm0, %v1643_v32, 0.0  ;;  %3598 = vmatprep.subr.bf16.mxu1 %v4294_v8  ;;  %v1837_v33 = vrot.slane %v4773_v27, %v1836_v31 }
 0x7db   : > { %1645 = vadd.xlane.f32.xlu0 %v1644_v34  ;;  %v3577_v35 = vpop.f32.mrf.mxu0 }
 0x864   : > { %v1646_v36 = vpop.xlane.xlu0 %1645 }
 0x865   : > { %v1647_v37 = vmul.f32 0.03125, %v1646_v36 }
 0x867   : > { %v1648_v42 = vsub.f32 %v1643_v32, %v1647_v37  ;;  %v1841_v32 = vsub.s32 5, %v4765_v25 }
 0x869   : > { %v1649_v43 = vmul.f32 %v1648_v42, %v1648_v42  ;;  %v1842_v36 = vrot.slane %v4773_v27, %v1841_v32 }
 0x86b   : > { %v1650_v44 = vsel %vm846_vm0, %v1649_v43, 0.0 }
 0x86c   : > { %1651 = vadd.xlane.f32.xlu0 %v1650_v44  ;;  %v3380_v44 = vld [vmem:[#allocation10 + $0x1] ss:$0 sm:$0xff] }
 0x8f5   : > { %v1652_v46 = vpop.xlane.xlu0 %1651 }
 0x8f6   : > { %v1653_v47 = vmul.f32 0.03125, %v1652_v46 }
 0x8f8   : > { %v1654_v48 = vadd.f32 1e-12, %v1653_v47 }
 0x8fa   : > { %3893 = vrsqrt.f32 %v1654_v48 }
 0x907   : > { %v3894_v52 = vpop.eup %3893 }
 0x908   : > { %v1656_v53 = vmul.f32 %v3894_v52, %v1648_v42 }
 0x90a   : > { %v1661_v56 = vmul.f32 %v1660_v51, %v1656_v53 }
 0x90c   : > { %v1666_v57 = vadd.f32 %v1665_v54, %v1661_v56 }
 0x90e   : > { %v1667_v58 = vpack.c.bf16 %v1666_v57, %v1666_v57 }
 0x910   : > { %3583 = vmatmul.mubr.msk.bf16.vlgmr.msra.gmra.mxu1 %vm846_vm0, %v1667_v58 }
 0x911   : > { %3602 = vmatprep.mubr.msk.bf16.mxu1 %vm4295_vm1, %v4294_v8  ;;  %3599 = vmatpush3.bf16.msra.mxu1 %v3857_v23 }
 0x912   : > { %3600 = vmatprep.subr.bf16.mxu1 %v4294_v8 }
 0x915   : > { %3601 = vmatpush3.bf16.msra.mxu1 %v3858_v24 }
 0x916   : > { %3606 = vmatprep.subr.bf16.mxu1 %v4294_v8 }
 0x9d0   : > { %v1728_v0 = vpop.f32.mrf.mxu1 }
 0x9d1   : > { %v1729_v38 = vadd.f32 %v3366_v63, %v1728_v0 }
 0x9d2   : > { %v3584_v1 = vpop.f32.mrf.mxu1 }
 0x9d3   : > { %v1735_v2 = vmul.f32 0.70710677, %v1729_v38  ;;  %v1734_v4 = vmul.f32 0.5, %v1729_v38 }
 0x9d4   : > { %v1731_v3 = vpop.f32.mrf.mxu1 }
 0x9d5   : > { %3895 = verf.f32 %v1735_v2 }
 0x9d6   : > { %v3585_v39 = vpop.f32.mrf.mxu1 }
 0x9e2   : > { %v3896_v40 = vpop.eup %3895 }
 0x9e3   : > { %v1737_v41 = vadd.f32 1.0, %v3896_v40 }
 0x9e5   : > { %v1738_v5 = vmul.f32 %v1737_v41, %v1734_v4 }
 0x9e7   : > { %v1739_v6 = vpack.c.bf16 %v1738_v5, %v1738_v5 }
 0x9e9   : > { %3595 = vmatmul.mubr.msk.bf16.vlgmr.msra.gmra.mxu0 %vm1776_vm4, %v1739_v6 }
 0x9ea   : > { %3614 = vmatprep.mubr.msk.bf16.mxu0 %vm4295_vm1, %v4294_v8 }
 0xaa9   : > { %v1814_v10 = vpop.f32.mrf.mxu0 }
 0xaaa   : > { %v1815_v11 = vadd.f32 %v1814_v10, %v1751_v9 }
 0xaab   : > { %v3596_v12 = vpop.f32.mrf.mxu0 }
 0xaac   : > { %v1820_v13 = vadd.f32 %v1815_v11, %v1666_v57 }
 0xaad   : > { %v1817_v14 = vpop.f32.mrf.mxu0 }
 0xaae   : > { %v1821_v15 = vsel %vm846_vm0, %v1820_v13, 0.0 }
 0xaaf   : > { %1822 = vadd.xlane.f32.xlu0 %v1821_v15  ;;  %v3597_v16 = vpop.f32.mrf.mxu0 }
 0xb38   : > { %v1823_v17 = vpop.xlane.xlu0 %1822 }
 0xb39   : > { %v1824_v19 = vmul.f32 0.03125, %v1823_v17 }
 0xb3b   : > { %v1825_v20 = vsub.f32 %v1820_v13, %v1824_v19 }
 0xb3d   : > { %v1826_v21 = vmul.f32 %v1825_v20, %v1825_v20 }
 0xb3f   : > { %v1827_v22 = vsel %vm846_vm0, %v1826_v21, 0.0 }
 0xb40   : > { %1828 = vadd.xlane.f32.xlu0 %v1827_v22 }
 0xbc9   : > { %v1829_v28 = vpop.xlane.xlu0 %1828 }
 0xbca   : > { %v1830_v29 = vmul.f32 0.03125, %v1829_v28 }
 0xbcc   : > { %v1831_v30 = vadd.f32 1e-12, %v1830_v29 }
 0xbce   : > { %3897 = vrsqrt.f32 %v1831_v30 }
 0xbdb   : > { %v3898_v34 = vpop.eup %3897 }
 0xbdc   : > { %v1833_v35 = vmul.f32 %v3898_v34, %v1825_v20 }
 0xbde   : > { %v1838_v37 = vmul.f32 %v1837_v33, %v1833_v35 }
 0xbe0   : > { %v4840_v42 = vadd.f32 %v1842_v36, %v1838_v37 }
 0xbe2   : > { %v1846_v43 = vpack.c.bf16 %v4840_v42, %v4840_v42 }
 0xbe4   : > { %3603 = vmatmul.mubr.msk.bf16.vlgmr.msra.gmra.mxu1 %vm846_vm0, %v1846_v43 }
 0xbe5   : > { %3608 = vmatprep.mubr.msk.bf16.mxu1 %vm4295_vm1, %v4294_v8 }
 0xca4   : > { %v1909_v45 = vpop.f32.mrf.mxu1 }
 0xca5   : > { %v1910_v18 = vadd.f32 %v3380_v44, %v1909_v45 }
 0xca6   : > { %v3604_v46 = vpop.f32.mrf.mxu1 }
 0xca7   : > { %1915 = vxpose.xlu0.b32.start.end [1/1] (short) (narrow) %v1910_v18, 96 }
 0xca8   : > { %v1912_v47 = vpop.f32.mrf.mxu1 }
 0xcaa   : > { %v3605_v48 = vpop.f32.mrf.mxu1 }
 0xd23   : > { %v1931_v51 = vpop.trf.xlu0 }
 0xd24   : > { %1947 = vxpose.xlu0.b32.start.end [1/1] (short) (narrow) %v1931_v51, 8 }
 0xd27   : > { %v1932_v27 = vpop.trf.xlu0 }
 0xd28   : > { %1979 = vxpose.xlu1.b32.start.end [1/1] (short) (narrow) %v1932_v27, 8 }
 0xd2b   : > { %v1933_v52 = vpop.trf.xlu0 }
 0xd2c   : > { %2011 = vxpose.xlu1.b32.start.end [1/1] (short) (narrow) %v1933_v52, 8 }
 0xd2f   : > { %v1934_v53 = vpop.trf.xlu0 }
 0xd30   : > { %2043 = vxpose.xlu1.b32.start.end [1/1] (short) (narrow) %v1934_v53, 8 }
 0xd33   : > { %v1935_v54 = vpop.trf.xlu0 }
 0xd34   : > { %v2079_v56 = vpack.c.bf16 %v1935_v54, %v1935_v54 }
 0xd36   : > { %v2087_v57 = vsel %vm1115_vm2, %v2079_v56, 0 }
 0xd37   : > { %3607 = vmatpush3.bf16.msra.mxu1 %v2087_v57  ;;  %v1936_v58 = vpop.trf.xlu0 }
 0xd38   : > { %v2080_v59 = vpack.c.bf16 %v1936_v58, %v1936_v58  ;;  %3618 = vmatprep.subr.bf16.mxu1 %v4294_v8 }
 0xd3a   : > { %v2133_v60 = vsel %vm1115_vm2, %v2080_v59, 0 }
 0xd3b   : > { %3613 = vmatpush3.bf16.msra.mxu0 %v2133_v60  ;;  %v1937_v61 = vpop.trf.xlu0 }
 0xd3c   : > { %3624 = vmatprep.subr.bf16.mxu0 %v4294_v8  ;;  %v2081_v2 = vpack.c.bf16 %v1937_v61, %v1937_v61 }
 0xd3e   : > { %v2179_v40 = vsel %vm1115_vm2, %v2081_v2, 0 }
 0xd3f   : > { %v1938_v62 = vpop.trf.xlu0 }
 0xd40   : > { %v2082_v4 = vpack.c.bf16 %v1938_v62, %v1938_v62 }
 0xd42   : > { %v2225_v6 = vsel %vm1115_vm2, %v2082_v4, 0 }
 0xd43   : > { %v4851_v63 = vpop.trf.xlu0 }
 0xd47   : > { %v4853_v0 = vpop.trf.xlu0 }
 0xd4b   : > { %v4855_v38 = vpop.trf.xlu0 }
 0xd4f   : > { %v4857_v1 = vpop.trf.xlu0 }
 0xda0   : > { %v1963_v3 = vpop.trf.xlu0 }
 0xda1   : > { %v2075_v39 = vpack.c.bf16 %v1963_v3, %v1963_v3 }
 0xda3   : > { %3609 = vmatmul.mubr.msk.bf16.vlgmr.msra.gmra.mxu1 %vm1111_vm3, %v2075_v39 }
 0xda4   : > { %3619 = vmatpush3.bf16.msra.mxu1 %v2179_v40  ;;  %v1995_v41 = vpop.trf.xlu1  ;;  %3620 = vmatprep.mubr.msk.bf16.mxu1 %vm4295_vm1, %v4294_v8 }
 0xda5   : > { %v2076_v5 = vpack.c.bf16 %v1995_v41, %v1995_v41  ;;  %3630 = vmatprep.subr.bf16.mxu1 %v4294_v8 }
 0xda7   : > { %3615 = vmatmul.mubr.msk.bf16.vlgmr.msra.gmra.mxu0 %vm1111_vm3, %v2076_v5 }
 0xda8   : > { %3625 = vmatpush3.bf16.msra.mxu0 %v2225_v6  ;;  %v2027_v9 = vpop.trf.xlu1  ;;  %3626 = vmatprep.mubr.msk.bf16.mxu0 %vm4295_vm1, %v4294_v8 }
 0xda9   : > { %v2077_v10 = vpack.c.bf16 %v2027_v9, %v2027_v9  ;;  %3636 = vmatprep.subr.bf16.mxu0 %v4294_v8 }
 0xdab   : > { %3621 = vmatmul.mubr.msk.bf16.vlgmr.msra.gmra.mxu1 %vm1111_vm3, %v2077_v10 }
 0xdac   : > { %v2059_v11 = vpop.trf.xlu1  ;;  %3632 = vmatprep.mubr.msk.bf16.mxu1 %vm4295_vm1, %v4294_v8 }
 0xdad   : > { %v2078_v12 = vpack.c.bf16 %v2059_v11, %v2059_v11 }
 0xdaf   : > { %3627 = vmatmul.mubr.msk.bf16.vlgmr.msra.gmra.mxu0 %vm1111_vm3, %v2078_v12 }
 0xdb0   : > { %3638 = vmatprep.mubr.msk.bf16.mxu0 %vm4295_vm1, %v4294_v8 }
 0xe63   : > { %v2123_v13 = vpop.f32.mrf.mxu1 }
 0xe64   : > { %v2267_v14 = vmul.f32 0.35355338, %v2123_v13 }
 0xe65   : > { %v3610_v15 = vpop.f32.mrf.mxu1 }
 0xe66   : > { %v2271_v16 = vadd.f32 %v4712_v55, %v2267_v14 }
 0xe67   : > { %v2126_v17 = vpop.f32.mrf.mxu1  ;;  %v2169_v19 = vpop.f32.mrf.mxu0 }
 0xe68   : > { %v2268_v20 = vmul.f32 0.35355338, %v2169_v19  ;;  %v2275_v21 = vsel %vm1111_vm3, %v2271_v16, -inf }
 0xe69   : > { %2276 = vmax.xlane.f32.xlu1 %v2275_v21  ;;  %v3611_v22 = vpop.f32.mrf.mxu1  ;;  %v3616_v23 = vpop.f32.mrf.mxu0 }
 0xe6a   : > { %v2272_v24 = vadd.f32 %v4712_v55, %v2268_v20 }
 0xe6b   : > { %v2172_v28 = vpop.f32.mrf.mxu0  ;;  %v2215_v29 = vpop.f32.mrf.mxu1 }
 0xe6c   : > { %v2269_v30 = vmul.f32 0.35355338, %v2215_v29  ;;  %v2278_v33 = vsel %vm1111_vm3, %v2272_v24, -inf  ;;  %v2319_v28 = vpack.c.bf16 %v4851_v63, %v4851_v63 }
 0xe6d   : > { %v3622_v34 = vpop.f32.mrf.mxu1  ;;  %2279 = vmax.xlane.f32.xlu0 %v2278_v33  ;;  %v3617_v35 = vpop.f32.mrf.mxu0 }
 0xe6e   : > { %v2273_v36 = vadd.f32 %v4712_v55, %v2269_v30  ;;  %v2320_v35 = vpack.c.bf16 %v4853_v0, %v4853_v0  ;;  %v2322_v0 = vpack.c.bf16 %v4857_v1, %v4857_v1 }
 0xe6f   : > { %v2218_v37 = vpop.f32.mrf.mxu1  ;;  %v2261_v43 = vpop.f32.mrf.mxu0 }
 0xe70   : > { %v2270_v44 = vmul.f32 0.35355338, %v2261_v43  ;;  %v2281_v45 = vsel %vm1111_vm3, %v2273_v36, -inf  ;;  %v2321_v37 = vpack.c.bf16 %v4855_v38, %v4855_v38  ;;  %v3859_v43 = vld [vmem:[%s5198_s15 + $0x18] sm:$0xff]   ;;  %v3860_v38 = vld [vmem:[%s5198_s15 + $0x10] sm:$0xff]  }
 0xe71   : > { %2282 = vmax.xlane.f32.xlu1 %v2281_v45  ;;  %v3623_v18 = vpop.f32.mrf.mxu1  ;;  %v3628_v46 = vpop.f32.mrf.mxu0 }
 0xe72   : > { %v2274_v47 = vadd.f32 %v4712_v55, %v2270_v44 }
 0xe73   : > { %v2264_v48 = vpop.f32.mrf.mxu0 }
 0xe74   : > { %v2284_v51 = vsel %vm1111_vm3, %v2274_v47, -inf }
 0xe75   : > { %2285 = vmax.xlane.f32.xlu1 %v2284_v51  ;;  %v3629_v27 = vpop.f32.mrf.mxu0 }
 0xef2   : > { %v2277_v52 = vpop.xlane.xlu1 %2276 }
 0xef3   : > { %v2287_v53 = vsub.f32 %v2271_v16, %v2277_v52 }
 0xef5   : > { %v2291_v54 = vmul.f32 1.442695, %v2287_v53 }
 0xef6   : > { %v2280_v56 = vpop.xlane.xlu0 %2279 }
 0xef7   : > { %3899 = vpow2.f32 %v2291_v54  ;;  %v2288_v57 = vsub.f32 %v2272_v24, %v2280_v56 }
 0xef9   : > { %v2293_v58 = vmul.f32 1.442695, %v2288_v57 }
 0xefa   : > { %v2283_v59 = vpop.xlane.xlu1 %2282 }
 0xefb   : > { %3901 = vpow2.f32 %v2293_v58  ;;  %v2289_v60 = vsub.f32 %v2273_v36, %v2283_v59 }
 0xefd   : > { %v2295_v61 = vmul.f32 1.442695, %v2289_v60 }
 0xefe   : > { %v2286_v62 = vpop.xlane.xlu1 %2285 }
 0xeff   : > { %3903 = vpow2.f32 %v2295_v61  ;;  %v2290_v2 = vsub.f32 %v2274_v47, %v2286_v62  ;;  %v4929_v62 = vld [vmem:[%s5115_s10 + $0x8] sm:$0x3f] }
 0xf01   : > { %v2297_v55 = vmul.f32 1.442695, %v2290_v2  ;;  %v2552_v2 = vrot.slane %v4929_v62, %v4768_v26 }
 0xf03   : > { %3905 = vpow2.f32 %v2297_v55 }
 0xf04   : > { %v3900_v3 = vpop.eup %3899 }
 0xf05   : > { %v2299_v39 = vsel %vm1111_vm3, %v3900_v3, 0.0 }
 0xf06   : > { %2300 = vadd.xlane.f32.xlu1 %v2299_v39 }
 0xf08   : > { %v3902_v40 = vpop.eup %3901 }
 0xf09   : > { %v2302_v4 = vsel %vm1111_vm3, %v3902_v40, 0.0 }
 0xf0a   : > { %2303 = vadd.xlane.f32.xlu1 %v2302_v4 }
 0xf0c   : > { %v3904_v41 = vpop.eup %3903 }
 0xf0d   : > { %v2305_v5 = vsel %vm1111_vm3, %v3904_v41, 0.0 }
 0xf0e   : > { %2306 = vadd.xlane.f32.xlu1 %v2305_v5 }
 0xf10   : > { %v3906_v6 = vpop.eup %3905 }
 0xf11   : > { %v2308_v9 = vsel %vm1111_vm3, %v3906_v6, 0.0 }
 0xf12   : > { %2309 = vadd.xlane.f32.xlu1 %v2308_v9 }
 0xf8f   : > { %v2301_v10 = vpop.xlane.xlu1 %2300 }
 0xf90   : > { %3907 = vrcp.f32 %v2301_v10 }
 0xf93   : > { %v2304_v11 = vpop.xlane.xlu1 %2303 }
 0xf94   : > { %3909 = vrcp.f32 %v2304_v11 }
 0xf97   : > { %v2307_v12 = vpop.xlane.xlu1 %2306 }
 0xf98   : > { %3911 = vrcp.f32 %v2307_v12 }
 0xf9b   : > { %v2310_v13 = vpop.xlane.xlu1 %2309 }
 0xf9c   : > { %3913 = vrcp.f32 %v2310_v13  ;;  %v3861_v13 = vld [vmem:[%s5199_s7 + $0x18] sm:$0xff]  }
 0xf9d   : > { %v3908_v14 = vpop.eup %3907 }
 0xf9e   : > { %v2315_v15 = vmul.f32 %v3908_v14, %v3900_v3 }
 0xfa0   : > { %v2323_v16 = vpack.c.bf16 %v2315_v15, %v2315_v15 }
 0xfa1   : > { %v3910_v17 = vpop.eup %3909 }
 0xfa2   : > { %v2331_v19 = vsel %vm1111_vm3, %v2323_v16, 0  ;;  %v2316_v20 = vmul.f32 %v3910_v17, %v3902_v40  ;;  %v2625_v17 = vrot.slane %v4929_v62, %v1659_v49  ;;  %v3864_v49 = vld [vmem:[%s5114_s9 + $0x30] sm:$0xff]  }
 0xfa3   : > { %3631 = vmatpush3.bf16.xpose.msra.mxu1 %v2331_v19 }
 0xfa4   : > { %v2324_v21 = vpack.c.bf16 %v2316_v20, %v2316_v20  ;;  %3642 = vmatprep.subr.bf16.mxu1 %v4294_v8 }
 0xfa5   : > { %v3912_v22 = vpop.eup %3911 }
 0xfa6   : > { %v2377_v23 = vsel %vm1111_vm3, %v2324_v21, 0  ;;  %v2317_v24 = vmul.f32 %v3912_v22, %v3904_v41  ;;  %v2630_v21 = vrot.slane %v4929_v62, %v1664_v50  ;;  %v3865_v50 = vld [vmem:[%s5114_s9 + $0x28] sm:$0xff]  }
 0xfa7   : > { %3637 = vmatpush3.bf16.xpose.msra.mxu0 %v2377_v23 }
 0xfa8   : > { %v2325_v29 = vpack.c.bf16 %v2317_v24, %v2317_v24  ;;  %3648 = vmatprep.subr.bf16.mxu0 %v4294_v8 }
 0xfa9   : > { %v3914_v30 = vpop.eup %3913 }
 0xfaa   : > { %3633 = vmatmul.mubr.msk.bf16.vlgmr.msra.gmra.mxu1 %vm1111_vm3, %v2319_v28  ;;  %v2423_v33 = vsel %vm1111_vm3, %v2325_v29, 0  ;;  %v2318_v34 = vmul.f32 %v3914_v30, %v3906_v6  ;;  %v3863_v28 = vld [vmem:[%s5114_s9 + $0x38] sm:$0xff]   ;;  %v3866_v29 = vld [vmem:[%s5114_s9 + $0x20] sm:$0xff]  }
 0xfab   : > { %3643 = vmatpush3.bf16.xpose.msra.mxu1 %v2423_v33  ;;  %3644 = vmatprep.mubr.msk.bf16.mxu1 %vm4295_vm1, %v4294_v8  ;;  %v3403_v30 = vld [vmem:[#allocation11 + $0x1] ss:$0 sm:$0xff] }
 0xfac   : > { %v2326_v36 = vpack.c.bf16 %v2318_v34, %v2318_v34  ;;  %3654 = vmatprep.subr.bf16.mxu1 %v4294_v8 }
 0xfae   : > { %3639 = vmatmul.mubr.msk.bf16.vlgmr.msra.gmra.mxu0 %vm1111_vm3, %v2320_v35  ;;  %v2469_v63 = vsel %vm1111_vm3, %v2326_v36, 0 }
 0xfaf   : > { %3649 = vmatpush3.bf16.xpose.msra.mxu0 %v2469_v63  ;;  %3650 = vmatprep.mubr.msk.bf16.mxu0 %vm4295_vm1, %v4294_v8 }
 0xfb0   : > { %3662 = vmatprep.subr.bf16.mxu0 %v4294_v8 }
 0xfb2   : > { %3645 = vmatmul.mubr.msk.bf16.vlgmr.msra.gmra.mxu1 %vm1111_vm3, %v2321_v37 }
 0xfb3   : > { %3658 = vmatprep.mubr.msk.bf16.mxu1 %vm4295_vm1, %v4294_v8  ;;  %3655 = vmatpush3.bf16.msra.mxu1 %v3859_v43 }
 0xfb4   : > { %3656 = vmatprep.subr.bf16.mxu1 %v4294_v8 }
 0xfb6   : > { %3651 = vmatmul.mubr.msk.bf16.vlgmr.msra.gmra.mxu0 %vm1111_vm3, %v2322_v0 }
 0xfb7   : > { %3666 = vmatprep.mubr.msk.bf16.mxu0 %vm4295_vm1, %v4294_v8  ;;  %3657 = vmatpush3.bf16.msra.mxu1 %v3860_v38 }
 0xfb8   : > { %3670 = vmatprep.subr.bf16.mxu1 %v4294_v8  ;;  %3663 = vmatpush3.bf16.msra.mxu0 %v3861_v13 }
 0xfb9   : > { %3664 = vmatprep.subr.bf16.mxu0 %v4294_v8 }
0x106a   : > { %v2367_v1 = vpop.f32.mrf.mxu1 }
0x106b   : > { %2511 = vxpose.xlu1.b32.start [1/4] (short) (narrow) %v2367_v1, 8 }
0x106c   : > { %v3634_v44 = vpop.f32.mrf.mxu1 }
0x106e   : > { %v2370_v45 = vpop.f32.mrf.mxu1  ;;  %v2413_v18 = vpop.f32.mrf.mxu0 }
0x106f   : > { %2512 = vxpose.xlu1.b32.cont [2/4] (short) (narrow) %v2413_v18, 8  ;;  %v2719_v45 = vrot.slane %v4929_v62, %v1750_v7  ;;  %v3868_v7 = vld [vmem:[%s5116_s11 + $0x8] sm:$0xff]  }
0x1070   : > { %v3635_v46 = vpop.f32.mrf.mxu1  ;;  %v3640_v47 = vpop.f32.mrf.mxu0 }
0x1072   : > { %v2416_v48 = vpop.f32.mrf.mxu0  ;;  %v2459_v51 = vpop.f32.mrf.mxu1 }
0x1073   : > { %2513 = vxpose.xlu1.b32.cont [3/4] (short) (narrow) %v2459_v51, 8 }
0x1074   : > { %v3641_v27 = vpop.f32.mrf.mxu0  ;;  %v3646_v52 = vpop.f32.mrf.mxu1 }
0x1076   : > { %v2462_v53 = vpop.f32.mrf.mxu1  ;;  %v2505_v54 = vpop.f32.mrf.mxu0 }
0x1077   : > { %2514 = vxpose.xlu1.b32.end [4/4] (short) (narrow) %v2505_v54, 8 }
0x1078   : > { %v3647_v56 = vpop.f32.mrf.mxu1  ;;  %v3652_v57 = vpop.f32.mrf.mxu0 }
0x107a   : > { %v2508_v58 = vpop.f32.mrf.mxu0 }
0x107c   : > { %v3653_v59 = vpop.f32.mrf.mxu0 }
0x107d   : > { %v3867_v59 = vld [vmem:[#allocation14 + $0x8] sm:$0xff]  }
0x10e7   : > { %v2527_v60 = vpop.trf.xlu1 }
0x10e8   : > { %v2543_v61 = vpack.c.bf16 %v2527_v60, %v2527_v60  ;;  %v3869_v60 = vld [vmem:[#allocation14] sm:$0xff]  }
0x10ea   : > { %3659 = vmatmul.mubr.msk.bf16.vlgmr.msra.gmra.mxu1 %vm846_vm0, %v2543_v61  ;;  %v3870_v61 = vld [vmem:[%s5116_s11] sm:$0xff]  }
0x10eb   : > { %3678 = vmatprep.mubr.msk.bf16.mxu1 %vm4295_vm1, %v4294_v8  ;;  %3671 = vmatpush3.bf16.msra.mxu1 %v3863_v28 }
0x10ec   : > { %3672 = vmatprep.subr.bf16.mxu1 %v4294_v8 }
0x10ef   : > { %3673 = vmatpush3.bf16.msra.mxu1 %v3864_v49 }
0x10f0   : > { %3674 = vmatprep.subr.bf16.mxu1 %v4294_v8 }
0x10f3   : > { %3675 = vmatpush3.bf16.msra.mxu1 %v3865_v50  ;;  %v3871_v50 = vld [vmem:[#allocation16 + $0x8] sm:$0xff]  }
0x10f4   : > { %3676 = vmatprep.subr.bf16.mxu1 %v4294_v8 }
0x10f7   : > { %3677 = vmatpush3.bf16.msra.mxu1 %v3866_v29  ;;  %v3872_v29 = vld [vmem:[#allocation16] sm:$0xff]  }
0x10f8   : > { %3698 = vmatprep.subr.bf16.mxu1 %v4294_v8 }
0x11aa   : > { %v2602_v55 = vpop.f32.mrf.mxu1 }
0x11ab   : > { %v2603_v3 = vadd.f32 %v2602_v55, %v2552_v2 }
0x11ac   : > { %v3660_v39 = vpop.f32.mrf.mxu1 }
0x11ad   : > { %v2608_v40 = vadd.f32 %v2603_v3, %v4840_v42  ;;  %v3862_v42 = vld [vmem:[%s5199_s7 + $0x10] sm:$0xff]   ;;  %v2804_v39 = vrot.slane %v4929_v62, %v1836_v31  ;;  %v3420_v31 = vld [vmem:[%s5121_s16] ss:$0 sm:$0xff] }
0x11ae   : > { %v2605_v4 = vpop.f32.mrf.mxu1  ;;  %3665 = vmatpush3.bf16.msra.mxu0 %v3862_v42 }
0x11af   : > { %v2609_v41 = vsel %vm846_vm0, %v2608_v40, 0.0  ;;  %3682 = vmatprep.subr.bf16.mxu0 %v4294_v8 }
0x11b0   : > { %2610 = vadd.xlane.f32.xlu0 %v2609_v41  ;;  %v3661_v5 = vpop.f32.mrf.mxu1  ;;  %v2809_v41 = vrot.slane %v4929_v62, %v1841_v32 }
0x1239   : > { %v2611_v6 = vpop.xlane.xlu0 %2610 }
0x123a   : > { %v2612_v9 = vmul.f32 0.03125, %v2611_v6 }
0x123c   : > { %v2613_v10 = vsub.f32 %v2608_v40, %v2612_v9 }
0x123e   : > { %v2614_v11 = vmul.f32 %v2613_v10, %v2613_v10 }
0x1240   : > { %v2615_v12 = vsel %vm846_vm0, %v2614_v11, 0.0 }
0x1241   : > { %2616 = vadd.xlane.f32.xlu0 %v2615_v12 }
0x12ca   : > { %v2617_v14 = vpop.xlane.xlu0 %2616 }
0x12cb   : > { %v2618_v15 = vmul.f32 0.03125, %v2617_v14 }
0x12cd   : > { %v2619_v16 = vadd.f32 1e-12, %v2618_v15 }
0x12cf   : > { %3915 = vrsqrt.f32 %v2619_v16 }
0x12dc   : > { %v3916_v19 = vpop.eup %3915 }
0x12dd   : > { %v2621_v20 = vmul.f32 %v3916_v19, %v2613_v10 }
0x12df   : > { %v2626_v22 = vmul.f32 %v2625_v17, %v2621_v20 }
0x12e1   : > { %v2631_v23 = vadd.f32 %v2630_v21, %v2626_v22 }
0x12e3   : > { %v2632_v24 = vpack.c.bf16 %v2631_v23, %v2631_v23 }
0x12e5   : > { %3667 = vmatmul.mubr.msk.bf16.vlgmr.msra.gmra.mxu0 %vm846_vm0, %v2632_v24 }
0x12e6   : > { %3686 = vmatprep.mubr.msk.bf16.mxu0 %vm4295_vm1, %v4294_v8  ;;  %3683 = vmatpush3.bf16.msra.mxu0 %v3867_v59 }
0x12e7   : > { %3684 = vmatprep.subr.bf16.mxu0 %v4294_v8 }
0x12ea   : > { %3685 = vmatpush3.bf16.msra.mxu0 %v3869_v60 }
0x12eb   : > { %3690 = vmatprep.subr.bf16.mxu0 %v4294_v8 }
0x13a5   : > { %v2695_v33 = vpop.f32.mrf.mxu0 }
0x13a6   : > { %v2696_v34 = vadd.f32 %v3403_v30, %v2695_v33 }
0x13a7   : > { %v3668_v35 = vpop.f32.mrf.mxu0 }
0x13a8   : > { %v2702_v36 = vmul.f32 0.70710677, %v2696_v34  ;;  %v2701_v43 = vmul.f32 0.5, %v2696_v34  ;;  %v2984_v35 = vld [vmem:[%s5117_s12] sm:$0x1] }
0x13a9   : > { %v2698_v63 = vpop.f32.mrf.mxu0 }
0x13aa   : > { %3917 = verf.f32 %v2702_v36 }
0x13ab   : > { %v3669_v37 = vpop.f32.mrf.mxu0 }
0x13ac   : > { %v3424_v37 = vld [vmem:[%s5122_s17] ss:$0 sm:$0xff] }
0x13b7   : > { %v3918_v0 = vpop.eup %3917 }
0x13b8   : > { %v2704_v38 = vadd.f32 1.0, %v3918_v0 }
0x13ba   : > { %v2705_v1 = vmul.f32 %v2704_v38, %v2701_v43  ;;  %v3425_v43 = vld [vmem:[%s5123_s18] ss:$0 sm:$0xff] }
0x13bc   : > { %v2706_v44 = vpack.c.bf16 %v2705_v1, %v2705_v1 }
0x13be   : > { %3679 = vmatmul.mubr.msk.bf16.vlgmr.msra.gmra.mxu1 %vm1776_vm4, %v2706_v44  ;;  %v3873_v44 = vld [vmem:[#allocation13 + $0x8] sm:$0xff]  }
0x13bf   : > { %3702 = vmatprep.mubr.msk.bf16.mxu1 %vm4295_vm1, %v4294_v8  ;;  %3699 = vmatpush3.bf16.msra.mxu1 %v3868_v7 }
0x13c0   : > { %3700 = vmatprep.subr.bf16.mxu1 %v4294_v8 }
0x13c3   : > { %3701 = vmatpush3.bf16.msra.mxu1 %v3870_v61 }
0x147e   : > { %v2781_v18 = vpop.f32.mrf.mxu1 }
0x147f   : > { %v2782_v46 = vadd.f32 %v2781_v18, %v2719_v45  ;;  %v3874_v18 = vld [vmem:[#allocation13] sm:$0xff]  }
0x1480   : > { %v3680_v47 = vpop.f32.mrf.mxu1 }
0x1481   : > { %v2787_v48 = vadd.f32 %v2782_v46, %v2631_v23 }
0x1482   : > { %v2784_v51 = vpop.f32.mrf.mxu1 }
0x1483   : > { %v2788_v27 = vsel %vm846_vm0, %v2787_v48, 0.0 }
0x1484   : > { %2789 = vadd.xlane.f32.xlu0 %v2788_v27  ;;  %v3681_v52 = vpop.f32.mrf.mxu1 }
0x150d   : > { %v2790_v53 = vpop.xlane.xlu0 %2789 }
0x150e   : > { %v2791_v54 = vmul.f32 0.03125, %v2790_v53 }
0x1510   : > { %v2792_v56 = vsub.f32 %v2787_v48, %v2791_v54  ;;  %v3426_v48 = vld [vmem:[%s5200_s1] ss:$0 sm:$0xff]  ;;  %s4171_s1 = scalar_lea.vmem %s4170_s13, 256 }
0x1511   : > { %p4173_p7 = scmp.lt.s32.totalorder %s4171_s1, %s4165_s4 }
0x1512   : > { %v2793_v57 = vmul.f32 %v2792_v56, %v2792_v56 }
0x1513   : > { %p4174_p5 = por %p4173_p7, %p4172_p2 }
0x1514   : > { %v2794_v58 = vsel %vm846_vm0, %v2793_v57, 0.0 }
0x1515   : > { %2795 = vadd.xlane.f32.xlu0 %v2794_v58  ;;  %p4175_p10 = pnand %p4174_p5, %p4168_p6 }
0x159e   : > { %v2796_v2 = vpop.xlane.xlu0 %2795 }
0x159f   : > { %v2797_v55 = vmul.f32 0.03125, %v2796_v2 }
0x15a1   : > { %v2798_v3 = vadd.f32 1e-12, %v2797_v55 }
0x15a3   : > { %3919 = vrsqrt.f32 %v2798_v3 }
0x15b0   : > { %v3920_v40 = vpop.eup %3919 }
0x15b1   : > { %v2800_v4 = vmul.f32 %v3920_v40, %v2792_v56 }
0x15b3   : > { %v2805_v5 = vmul.f32 %v2804_v39, %v2800_v4 }
0x15b5   : > { %v2810_v6 = vadd.f32 %v2809_v41, %v2805_v5 }
0x15b7   : > { %v2811_v9 = vpack.c.bf16 %v2810_v6, %v2810_v6 }
0x15b9   : > { %3687 = vmatmul.mubr.msk.bf16.vlgmr.msra.gmra.mxu0 %vm846_vm0, %v2811_v9  ;;  %3703 = vmatmul.mubr.msk.bf16.vlgmr.msra.gmra.mxu1 %vm846_vm0, %v2811_v9 }
0x15ba   : > { %3694 = vmatprep.mubr.msk.bf16.mxu0 %vm4295_vm1, %v4294_v8  ;;  %3691 = vmatpush3.bf16.msra.mxu0 %v3871_v50 }
0x15bb   : > { %3692 = vmatprep.subr.bf16.mxu0 %v4294_v8 }
0x15be   : > { %3693 = vmatpush3.bf16.msra.mxu0 %v3872_v29 }
0x15bf   : > { %3706 = vmatprep.subr.bf16.mxu0 %v4294_v8 }
0x1679   : > { %v2872_v10 = vpop.f32.mrf.mxu0  ;;  %v3031_v11 = vpop.f32.mrf.mxu1 }
0x167a   : > { %v2873_v12 = vadd.f32 %v3420_v31, %v2872_v10  ;;  %v3032_v36 = vadd.f32 %v3031_v11, %v2984_v35 }
0x167b   : > { %v3688_v25 = vpop.f32.mrf.mxu0  ;;  %v3704_v13 = vpop.f32.mrf.mxu1 }
0x167c   : > { %v2879_v32 = vmul.f32 0.70710677, %v2873_v12  ;;  %v2878_v17 = vmul.f32 0.5, %v2873_v12 }
0x167d   : > { %v2875_v62 = vpop.f32.mrf.mxu0  ;;  %v3034_v42 = vpop.f32.mrf.mxu1 }
0x167e   : > { %3921 = verf.f32 %v2879_v32 }
0x167f   : > { %v3689_v14 = vpop.f32.mrf.mxu0  ;;  %v3705_v15 = vpop.f32.mrf.mxu1 }
0x168b   : > { %v3922_v16 = vpop.eup %3921 }
0x168c   : > { %v2881_v19 = vadd.f32 1.0, %v3922_v16 }
0x168e   : > { %v2882_v20 = vmul.f32 %v2881_v19, %v2878_v17 }
0x1690   : > { %v2885_v21 = vsel %vm846_vm0, %v2882_v20, 0.0 }
0x1691   : > { %2886 = vadd.xlane.f32.xlu0 %v2885_v21 }
0x171a   : > { %v2887_v22 = vpop.xlane.xlu0 %2886 }
0x171b   : > { %v2888_v23 = vmul.f32 0.03125, %v2887_v22 }
0x171d   : > { %v2889_v24 = vsub.f32 %v2882_v20, %v2888_v23 }
0x171f   : > { %v2890_v28 = vmul.f32 %v2889_v24, %v2889_v24 }
0x1721   : > { %v2891_v49 = vsel %vm846_vm0, %v2890_v28, 0.0 }
0x1722   : > { %2892 = vadd.xlane.f32.xlu0 %v2891_v49 }
0x17ab   : > { %v2893_v30 = vpop.xlane.xlu0 %2892 }
0x17ac   : > { %v2894_v33 = vmul.f32 0.03125, %v2893_v30 }
0x17ae   : > { %v2895_v34 = vadd.f32 1e-12, %v2894_v33 }
0x17b0   : > { %3923 = vrsqrt.f32 %v2895_v34 }
0x17b1   : > { %3925 = vtanh.f32 %v3032_v36 }
0x17bd   : > { %v3924_v63 = vpop.eup %3923 }
0x17be   : > { %v2897_v0 = vmul.f32 %v3924_v63, %v2889_v24  ;;  %v3926_v46 = vpop.eup %3925 }
0x17bf   : > { %v3038_v47 = vpack.c.bf16 %v3926_v46, %v3926_v46 }
0x17c0   : > { %v2904_v38 = vmul.f32 %v3424_v37, %v2897_v0 }
0x17c2   : > { %v2911_v1 = vadd.f32 %v3425_v43, %v2904_v38 }
0x17c4   : > { %v2912_v45 = vpack.c.bf16 %v2911_v1, %v2911_v1 }
0x17c6   : > { %3695 = vmatmul.mubr.msk.bf16.vlgmr.msra.gmra.mxu0 %vm846_vm0, %v2912_v45 }
0x17c7   : > { %3707 = vmatpush3.bf16.msra.mxu0 %v3873_v44  ;;  %3710 = vmatprep.mubr.msk.bf16.mxu0 %vm4295_vm1, %v4294_v8 }
0x17c8   : > { %3708 = vmatprep.subr.bf16.mxu0 %v4294_v8 }
0x17cb   : > { %3709 = vmatpush3.bf16.msra.mxu0 %v3874_v18 }
0x17ce   : > { %3711 = vmatmul.mubr.msk.bf16.vlgmr.msra.gmra.mxu0 %vm846_vm0, %v3038_v47 }
0x1886   : > { %v2973_v51 = vpop.f32.mrf.mxu0 }
0x1887   : > { %v2974_v27 = vadd.f32 %v3426_v48, %v2973_v51 }
0x1888   : > { %v3696_v8 = vpop.f32.mrf.mxu0 }
0x1889   : > { %2979 = vst [vmem:[%s833_s20] sm:$0xff] %v2974_v27 }
0x188a   : > { %v2976_v52 = vpop.f32.mrf.mxu0 }
0x188b   : > { %4178 = shalt.err (!%p4175_p10)
}
0x188c   : > { %s4179_s20 = scalar_lea.hbm %s5027_s27, 128  ;;  %s4183_s26 = scalar_lea.hbm %s5201_s24, 256 }
0x188d   : > { %p4180_p11 = scmp.ne.s32.totalorder %s5027_s27, %s4179_s20  ;;  %p4184_p0 = scmp.lt.s32.totalorder %s5027_s27, %s5201_s24 }
0x188e   : > { %p4185_p3 = scmp.lt.s32.totalorder %s4183_s26, %s4179_s20 }
0x188f   : > { %p4181_p12 = pnand %p4180_p11, %p5202_p9 }
0x1890   : > { %p4186_p4 = por %p4185_p3, %p4184_p0 }
0x1891   : > { %p4182_p13 = pneg %p4181_p12 }
0x1893   : > { %p4187_p8 = pnand %p4186_p4, %p4182_p13 }
0x1895   : > { %4190 = shalt.err (!%p4187_p8)
}
0x1896   : > { %3746 = dma.vmem_to_hbm [thread:$0]  (%p5202_p9), %s5029_s2, 128, %s5027_s27, %s3105_s6   ;;  %v3697_v53 = vpop.f32.mrf.mxu0 }
0x1897   : > { %s5203_s1 = sld [smem:[#allocation41_spill]]  ;;  %s840_s7 = scalar_lea.vmem [#allocation18], %s4629_s19 }
0x1898   : > { %v3093_v56 = vpop.f32.mrf.mxu0  ;;  %s3136_s29 = sshll.u32 %s840_s7, 4  ;;  %s5204_s20 = sshll.u32 %s4434_s23, 7  ;;  %s5064_s29 = int_to_ptr.vmem [resolvable:$true] %s3136_s29 }
0x1899   : > { %s5205_s26 = sld [smem:[#allocation46_spill]]  ;;  %s3110_s19 = scalar_lea.sflag [#allocation19], %s4626_s22 }
0x189a   : > { %v3712_v58 = vpop.f32.mrf.mxu0  ;;  %s4191_s2 = scalar_lea.vmem %s5064_s29, 128  ;;  %s4297_s23 = smov [#allocation18]  }
0x189b   : > { %p4192_p1 = scmp.ne.s32.totalorder %s5064_s29, %s4191_s2  ;;  %s4195_s27 = sshll.u32 %s4297_s23, 4  ;;  %s4196_s27 = int_to_ptr.vmem [resolvable:$false] %s4195_s27 }
0x189c   : > { %v3096_v7 = vpop.f32.mrf.mxu0  ;;  %s4197_s6 = scalar_lea.vmem %s4196_s27, 256  ;;  %p4198_p7 = scmp.lt.s32.totalorder %s5064_s29, %s4196_s27 }
0x189d   : > { %v3043_v54 = vld [vmem:[%s5203_s1] sm:$0x1]  ;;  %p4193_p6 = pnand %p4192_p1, %p5202_p9  ;;  %p4199_p5 = scmp.lt.s32.totalorder %s4197_s6, %s4191_s2 }
0x189e   : > { %v3094_v57 = vadd.f32 %v3093_v56, %v3043_v54  ;;  %v3713_v60 = vpop.f32.mrf.mxu0 }
0x189f   : > { %s5062_s8 = scalar_lea.hbm %s5205_s26, %s5204_s20  ;;  %p4194_p2 = pneg %p4193_p6 }
0x18a0   : > { %v3102_v59 = vrot.slane %v3094_v57, %v4768_v26  ;;  %p4200_p10 = por %p4199_p5, %p4198_p7 }
0x18a2   : > { %3103 = vst [vmem:[%s840_s7] sm:$0xff] %v3102_v59  ;;  %p4201_p11 = pnand %p4200_p10, %p4194_p2 }
0x18a4   : > { %4204 = shalt.err (!%p4201_p11)
}
0x18a5   : > { %s4205_s4 = scalar_lea.hbm %s5062_s8, 128  ;;  %s4209_s1 = scalar_lea.hbm %s5205_s26, 256 }
0x18a6   : > { %p4206_p12 = scmp.ne.s32.totalorder %s5062_s8, %s4205_s4  ;;  %p4210_p3 = scmp.lt.s32.totalorder %s5062_s8, %s5205_s26 }
0x18a7   : > { %p4211_p4 = scmp.lt.s32.totalorder %s4209_s1, %s4205_s4 }
0x18a8   : > { %p4207_p13 = pnand %p4206_p12, %p5202_p9 }
0x18a9   : > { %p4212_p8 = por %p4211_p4, %p4210_p3 }
0x18aa   : > { %p4208_p0 = pneg %p4207_p13 }
0x18ac   : > { %p4213_p1 = pnand %p4212_p8, %p4208_p0 }
0x18ae   : > { %4216 = shalt.err (!%p4213_p1)
}
0x18af   : > { %3747 = dma.vmem_to_hbm [thread:$0]  (%p5202_p9), %s5064_s29, 128, %s5062_s8, %s3110_s19  }
0x18b0 PF: > { %s3148_s5 = sand.u32 1, %s4267_s3   ;;  %p5206_p6 = scmp.ne.s32.totalorder %s5182_s25, 0 }
0x18b1   : > { %p5207_p2 = scmp.ge.s32.totalorder %s4279_s30, 2  ;;  %s3149_s14 = scalar_lea.sflag [#allocation4], %s3148_s5 }
0x18b3   : > { %p3780_p7 = pnand %p5207_p2, %p5206_p6 }
0x18b5   : > { %p3781_p5 = pneg %p3780_p7 }
0x18b7   : > { %4258 = dma.done.wait (%p3781_p5), %s3149_s14, 128  }
0x18b8   : > { %4260 = vsyncadd (%p3781_p5), %s3149_s14, 4294967168  ;;  %s3158_s2 = scalar_lea.sflag [#allocation19], %s3148_s5 }
0x18b9   : > { %4262 = dma.done.wait (%p3781_p5), %s3158_s2, 128  }
0x18ba   : > { %4264 = vsyncadd (%p3781_p5), %s3158_s2, 4294967168  ;;  %s5208_s30 = sld [smem:[#allocation29_spill]]  ;;  %s5211_s3 = smov %s4271_s28 }
0x18bb   : > { %s5209_s0 = sld [smem:[#allocation28_spill]] }
0x18bc   : > { %s5210_s29 = sld [smem:[#allocation30_spill]] }
0x18c0   : > { %p45_p9 = scmp.ge.s32.totalorder %s5208_s30, 4  }
0x18c1   : > { %s5212_s28 = smov %s5209_s0 }
0x18c2   :  { %47 = sbr.rel (!%p45_p9) target bundleno = 29 (0x1d), region = 214 }
0x18c7   :  { %3163 = vsyncpa [#allocation3], 1 }
0x18c8   :  { %3165 = vsyncpa [#allocation3 + $0x1], 1 }
0x18c9   :  { %3166 = vsyncpa [#allocation6], 1 }
0x18ca   :  { %3168 = vsyncpa [#allocation6 + $0x1], 1 }
0x18cb   :  { %3169 = vsyncpa [#allocation9], 1 }
0x18cc   :  { %3170 = vsyncpa [#allocation12], 1 }
0x18cd   :  { %3171 = vsyncpa [#allocation15], 1 }
0x18ce   :  { %3172 = vsyncpa [#allocation4], 1 }
0x18cf   :  { %3174 = vsyncpa [#allocation4 + $0x1], 1 }
0x18d0   :  { %3175 = vsyncpa [#allocation19], 1 }
0x18d1   :  { %3177 = vsyncpa [#allocation19 + $0x1], 1 }

</bundles_post_ra>
